<compile_context>
chip_gen: v7x
topology: tpu7x:2x2x1
jax: 0.10.0
libtpu: 0.0.40
codegen_flags: <defaults>
</compile_context>

<pallas_src>
import jax
import jax.numpy as jnp
from jax.experimental import pallas as pl
from jax.experimental.pallas import tpu as pltpu


# ----------------------------------------------------------------------------
# Fused kernel: 3 LSTM layers (wavefront) + Linear->ReLU->Linear->Sigmoid head.
# ----------------------------------------------------------------------------
def _make_fused_kernel(num_layers, B, T, H):
    f32, bf16 = jnp.float32, jnp.bfloat16

    def kernel(*refs):
        x_ref = refs[0]                                      # (T*B, Din) bf16, time-major
        lstm_refs = refs[1:1 + 3 * num_layers]               # wx, wh, b per layer
        pw1_ref, pb1_ref, pw2_ref, pb2_ref = refs[1 + 3 * num_layers:
                                                  5 + 3 * num_layers]
        out_ref = refs[5 + 3 * num_layers]                   # (T*B, H) f32
        gbuf, hbuf = refs[6 + 3 * num_layers:]               # VMEM scratch

        # Load weights once into vregs (bf16 -> single-pass MXU pushes).
        wx = [lstm_refs[3 * l + 0][...] for l in range(num_layers)]
        wh = [lstm_refs[3 * l + 1][...] for l in range(num_layers)]
        # Bias broadcasts hoisted out of the unrolled loops (JAX doesn't CSE them).
        b_bc = [jnp.broadcast_to(lstm_refs[3 * l + 2][...], (B, 4 * H))
                for l in range(1, num_layers)]

        # Layer 0: input->gate term for ALL timesteps in ONE matmul, written once
        # to a time-major scratch so per-step reads are contiguous 2-sublane loads.
        gbuf[...] = (jnp.dot(x_ref[...], wx[0], preferred_element_type=f32)
                     + lstm_refs[2][...])                    # (T*B, 4H) f32

        def cell(g, c_prev):
            # Two full-width EUP passes (minimum), then static lane slices (XLU).
            sg = jax.nn.sigmoid(g)
            tg = jnp.tanh(g)
            i_g = sg[:, 0 * H:1 * H]
            f_g = sg[:, 1 * H:2 * H]
            g_g = tg[:, 2 * H:3 * H]
            o_g = sg[:, 3 * H:4 * H]
            c_new = f_g * c_prev + i_g * g_g                 # f32 elementwise state math
            h_new = o_g * jnp.tanh(c_new)
            return h_new, c_new

        h = [jnp.zeros((B, H), f32) for _ in range(num_layers)]
        c = [jnp.zeros((B, H), f32) for _ in range(num_layers)]
        feed = [None] * num_layers                           # layer l's h_t for layer l+1

        # Wavefront over (layer, time): step s computes layer l at t = s - l.
        # The per-step matmuls of different layers are mutually independent, so
        # only T + L - 1 matmul latencies are exposed instead of L * T.
        for s in range(T + num_layers - 1):
            new_feed = list(feed)
            for l in range(num_layers):
                t = s - l
                if t < 0 or t >= T:
                    continue
                h_prev = h[l].astype(bf16)
                if l == 0:
                    g = (gbuf[t * B:(t + 1) * B, :]
                         + jnp.dot(h_prev, wh[0], preferred_element_type=f32))
                else:
                    # Input + recurrent terms as two independent MXU pushes; both
                    # operands are ready, so they pipeline back-to-back.
                    g = (jnp.dot(feed[l - 1], wx[l], preferred_element_type=f32)
                         + jnp.dot(h_prev, wh[l], preferred_element_type=f32)
                         + b_bc[l - 1])
                h[l], c[l] = cell(g, c[l])
                new_feed[l] = h[l].astype(bf16)
            feed = new_feed
            # Last layer's h_t: one contiguous (B, H) store, off the critical path.
            t_out = s - (num_layers - 1)
            if 0 <= t_out < T:
                hbuf[t_out * B:(t_out + 1) * B, :] = h[num_layers - 1]

        # Output projection on the whole (T*B, H) slab; single contiguous store.
        h_all = hbuf[...]
        z = jnp.maximum(
            jnp.dot(h_all.astype(bf16), pw1_ref[...], preferred_element_type=f32)
            + pb1_ref[...], 0.0)
        # TODO(synk): nn.Dropout(0.2) after the ReLU (and the inter-layer LSTM
        # dropout) is training-only; identity in this eval-mode forward.
        y = jax.nn.sigmoid(
            jnp.dot(z.astype(bf16), pw2_ref[...], preferred_element_type=f32)
            + pb2_ref[...])
        out_ref[...] = y

    return kernel


# ----------------------------------------------------------------------------
# Wrapper: single fused, grid-less pallas_call; tiny time-major transpose only.
# ----------------------------------------------------------------------------
def lstm_embedder_forward(x, params):
    """x: (B, T, input_dim) batch_first (as in PyTorch). Returns (B, T, H)."""
    B, T, Din = x.shape
    num_layers = len(params["lstm"])
    H = params["lstm"][0][1].shape[0]
    bf16 = jnp.bfloat16

    # Time-major flatten (row t*B + b): per-step kernel accesses become
    # contiguous static slices.  Transposing a (2, 8, 4) array is free.
    x_tm = jnp.swapaxes(x, 0, 1).reshape(T * B, Din).astype(bf16)

    flat = [x_tm]
    for (wx, wh, b) in params["lstm"]:
        flat += [wx.astype(bf16), wh.astype(bf16), b]        # biases stay f32
    flat += [params["w1"].astype(bf16), params["b1"],
             params["w2"].astype(bf16), params["b2"]]

    vmem = pl.BlockSpec(memory_space=pltpu.MemorySpace.VMEM)

    # Whole working set (<150 KiB) is VMEM-resident on v5e/v6e/v7x; no grid needed.
    # TODO(synk): for large B, add a leading batch-block grid axis marked
    # "parallel" (v7x megacore / MXU fill) and block the gate scratch along B*T.
    y_tm = pl.pallas_call(
        _make_fused_kernel(num_layers, B, T, H),
        out_shape=jax.ShapeDtypeStruct((T * B, H), jnp.float32),
        in_specs=[vmem] * len(flat),
        out_specs=vmem,
        scratch_shapes=[
            pltpu.VMEM((T * B, 4 * H), jnp.float32),   # layer-0 gate precompute (time-major)
            pltpu.VMEM((T * B, H), jnp.float32),       # last-layer hidden states (time-major)
        ],
    )(*flat)

    # Back to batch_first: (T*B, H) -> (T, B, H) -> (B, T, H); free reshapes.
    return jnp.swapaxes(y_tm.reshape(T, B, H), 0, 1)


# ----------------------------------------------------------------------------
# Deterministic parameter init (PyTorch-style U(-1/sqrt(H), 1/sqrt(H))).
# ----------------------------------------------------------------------------
def init_params(key, input_dim, hidden_dim, num_layers):
    k = 1.0 / jnp.sqrt(hidden_dim)
    lstm_params = []
    for layer in range(num_layers):
        d_in = input_dim if layer == 0 else hidden_dim
        key, k1, k2, k3, k4 = jax.random.split(key, 5)
        # PyTorch stores weight_ih: (4H, d_in), weight_hh: (4H, H); we keep them
        # pre-transposed so the kernel does x @ Wx + h @ Wh. Gate order [i,f,g,o].
        wx = jax.random.uniform(k1, (d_in, 4 * hidden_dim), jnp.float32, -k, k)
        wh = jax.random.uniform(k2, (hidden_dim, 4 * hidden_dim), jnp.float32, -k, k)
        b_ih = jax.random.uniform(k3, (4 * hidden_dim,), jnp.float32, -k, k)
        b_hh = jax.random.uniform(k4, (4 * hidden_dim,), jnp.float32, -k, k)
        b = (b_ih + b_hh).reshape(1, 4 * hidden_dim)
        lstm_params.append((wx, wh, b))

    key, k1, k2, k3, k4 = jax.random.split(key, 5)
    w1 = jax.random.uniform(k1, (hidden_dim, hidden_dim), jnp.float32, -k, k)
    b1 = jax.random.uniform(k2, (1, hidden_dim), jnp.float32, -k, k)
    w2 = jax.random.uniform(k3, (hidden_dim, hidden_dim), jnp.float32, -k, k)
    b2 = jax.random.uniform(k4, (1, hidden_dim), jnp.float32, -k, k)
    return {"lstm": lstm_params, "w1": w1, "b1": b1, "w2": w2, "b2": b2}


# ----------------------------------------------------------------------------
# Pure-JAX reference. matmul_dtype=bfloat16 reproduces the kernel's numerics
# (bf16 operands, f32 accumulate); float32 gives the exact module semantics.
# ----------------------------------------------------------------------------
def reference_forward(x, params, matmul_dtype=jnp.float32):
    def mm(a, w):
        return jnp.dot(a.astype(matmul_dtype), w.astype(matmul_dtype),
                       preferred_element_type=jnp.float32,
                       precision=jax.lax.Precision.HIGHEST)

    B, T, _ = x.shape
    h_all = x
    for (wx, wh, b) in params["lstm"]:
        H = wh.shape[0]
        h = jnp.zeros((B, H), jnp.float32)
        c = jnp.zeros((B, H), jnp.float32)
        outs = []
        for t in range(T):
            g = mm(h_all[:, t, :], wx) + mm(h, wh) + b
            i = jax.nn.sigmoid(g[:, 0 * H:1 * H])
            f = jax.nn.sigmoid(g[:, 1 * H:2 * H])
            gg = jnp.tanh(g[:, 2 * H:3 * H])
            o = jax.nn.sigmoid(g[:, 3 * H:4 * H])
            c = f * c + i * gg
            h = o * jnp.tanh(c)
            outs.append(h)
        h_all = jnp.stack(outs, axis=1)

    H = params["w1"].shape[0]
    z = jnp.maximum(mm(h_all.reshape(B * T, H), params["w1"]) + params["b1"], 0.0)
    y = jax.nn.sigmoid(mm(z, params["w2"]) + params["b2"])
    return y.reshape(B, T, H)


if __name__ == "__main__":
    B, T, INPUT_DIM, HIDDEN_DIM, NUM_LAYERS = 2, 8, 4, 32, 3

    key = jax.random.PRNGKey(0)
    key_x, key_p = jax.random.split(key)
    x = jax.random.normal(key_x, (B, T, INPUT_DIM), dtype=jnp.float32)
    params = init_params(key_p, INPUT_DIM, HIDDEN_DIM, NUM_LAYERS)

    fwd = jax.jit(lstm_embedder_forward)
    out = jax.block_until_ready(fwd(x, params))
    assert out.shape == (B, T, HIDDEN_DIM), out.shape

    # Numerics-matched reference (same bf16 matmul operands, f32 accumulate).
    ref_matched = reference_forward(x, params, matmul_dtype=jnp.bfloat16)
    err_matched = float(jnp.max(jnp.abs(out - ref_matched)))
    assert jnp.allclose(out, ref_matched, atol=2e-3, rtol=2e-3), err_matched

    # Sanity vs. full-f32 module semantics (bf16 operand rounding only).
    ref_f32 = reference_forward(x, params, matmul_dtype=jnp.float32)
    err_f32 = float(jnp.max(jnp.abs(out - ref_f32)))
    assert jnp.allclose(out, ref_f32, atol=5e-2, rtol=5e-2), err_f32

    print("KERNEL_OK")
</pallas_src>

<mosaic_0001>
module attributes {stable_mosaic.version = 11 : i64} {
  func.func @kernel(%arg0: memref<16x4xbf16, #tpu.memory_space<vmem>>, %arg1: memref<4x128xbf16, #tpu.memory_space<vmem>>, %arg2: memref<32x128xbf16, #tpu.memory_space<vmem>>, %arg3: memref<1x128xf32, #tpu.memory_space<vmem>>, %arg4: memref<32x128xbf16, #tpu.memory_space<vmem>>, %arg5: memref<32x128xbf16, #tpu.memory_space<vmem>>, %arg6: memref<1x128xf32, #tpu.memory_space<vmem>>, %arg7: memref<32x128xbf16, #tpu.memory_space<vmem>>, %arg8: memref<32x128xbf16, #tpu.memory_space<vmem>>, %arg9: memref<1x128xf32, #tpu.memory_space<vmem>>, %arg10: memref<32x32xbf16, #tpu.memory_space<vmem>>, %arg11: memref<1x32xf32, #tpu.memory_space<vmem>>, %arg12: memref<32x32xbf16, #tpu.memory_space<vmem>>, %arg13: memref<1x32xf32, #tpu.memory_space<vmem>>, %arg14: memref<16x32xf32, #tpu.memory_space<vmem>>, %arg15: memref<16x128xf32, #tpu.memory_space<vmem>>, %arg16: memref<16x32xf32, #tpu.memory_space<vmem>>) attributes {dimension_semantics = [], scalar_prefetch = 0 : i64, scratch_operands = 2 : i64, tpu.core_type = #tpu.core_type<tc>} {
    %c0 = arith.constant 0 : index
    %c0_0 = arith.constant 0 : index
    %0 = vector.load %arg1[%c0, %c0_0] : memref<4x128xbf16, #tpu.memory_space<vmem>>, vector<4x128xbf16>
    %c0_1 = arith.constant 0 : index
    %c0_2 = arith.constant 0 : index
    %1 = vector.load %arg4[%c0_1, %c0_2] : memref<32x128xbf16, #tpu.memory_space<vmem>>, vector<32x128xbf16>
    %c0_3 = arith.constant 0 : index
    %c0_4 = arith.constant 0 : index
    %2 = vector.load %arg7[%c0_3, %c0_4] : memref<32x128xbf16, #tpu.memory_space<vmem>>, vector<32x128xbf16>
    %c0_5 = arith.constant 0 : index
    %c0_6 = arith.constant 0 : index
    %3 = vector.load %arg2[%c0_5, %c0_6] : memref<32x128xbf16, #tpu.memory_space<vmem>>, vector<32x128xbf16>
    %c0_7 = arith.constant 0 : index
    %c0_8 = arith.constant 0 : index
    %4 = vector.load %arg5[%c0_7, %c0_8] : memref<32x128xbf16, #tpu.memory_space<vmem>>, vector<32x128xbf16>
    %c0_9 = arith.constant 0 : index
    %c0_10 = arith.constant 0 : index
    %5 = vector.load %arg8[%c0_9, %c0_10] : memref<32x128xbf16, #tpu.memory_space<vmem>>, vector<32x128xbf16>
    %c0_11 = arith.constant 0 : index
    %c0_12 = arith.constant 0 : index
    %6 = vector.load %arg6[%c0_11, %c0_12] : memref<1x128xf32, #tpu.memory_space<vmem>>, vector<1x128xf32>
    %7 = vector.shape_cast %6 : vector<1x128xf32> to vector<1x128xf32>
    %8 = vector.broadcast %7 : vector<1x128xf32> to vector<2x128xf32>
    %c0_13 = arith.constant 0 : index
    %c0_14 = arith.constant 0 : index
    %9 = vector.load %arg9[%c0_13, %c0_14] : memref<1x128xf32, #tpu.memory_space<vmem>>, vector<1x128xf32>
    %10 = vector.shape_cast %9 : vector<1x128xf32> to vector<1x128xf32>
    %11 = vector.broadcast %10 : vector<1x128xf32> to vector<2x128xf32>
    %c0_15 = arith.constant 0 : index
    %c0_16 = arith.constant 0 : index
    %12 = vector.load %arg0[%c0_15, %c0_16] : memref<16x4xbf16, #tpu.memory_space<vmem>>, vector<16x4xbf16>
    %cst = arith.constant dense<0.000000e+00> : vector<16x128xf32>
    %13 = tpu.matmul %12, %0, %cst {dimension_numbers = #tpu.dot_dimension_numbers<[1], [0], [0], [1], [0, 0, 1, 1], [], []>} : vector<16x4xbf16>, vector<4x128xbf16>, vector<16x128xf32> -> vector<16x128xf32>
    %c0_17 = arith.constant 0 : index
    %c0_18 = arith.constant 0 : index
    %14 = vector.load %arg3[%c0_17, %c0_18] : memref<1x128xf32, #tpu.memory_space<vmem>>, vector<1x128xf32>
    %15 = vector.broadcast %14 : vector<1x128xf32> to vector<16x128xf32>
    %16 = arith.addf %13, %15 : vector<16x128xf32>
    %c0_19 = arith.constant 0 : index
    %c0_20 = arith.constant 0 : index
    %17 = vector.load %arg15[%c0_19, %c0_20] : memref<16x128xf32, #tpu.memory_space<vmem>>, vector<16x128xf32>
    tpu.vector_store %arg15[%c0_19, %c0_20], %16 {strides = array<i32>} : memref<16x128xf32, #tpu.memory_space<vmem>>, vector<16x128xf32>,
    %cst_21 = arith.constant 0.000000e+00 : f32
    %18 = vector.broadcast %cst_21 : f32 to vector<2x32xf32>
    %cst_22 = arith.constant 0.000000e+00 : f32
    %19 = vector.broadcast %cst_22 : f32 to vector<2x32xf32>
    %cst_23 = arith.constant 0.000000e+00 : f32
    %20 = vector.broadcast %cst_23 : f32 to vector<2x32xf32>
    %cst_24 = arith.constant 0.000000e+00 : f32
    %21 = vector.broadcast %cst_24 : f32 to vector<2x32xf32>
    %cst_25 = arith.constant 0.000000e+00 : f32
    %22 = vector.broadcast %cst_25 : f32 to vector<2x32xf32>
    %cst_26 = arith.constant 0.000000e+00 : f32
    %23 = vector.broadcast %cst_26 : f32 to vector<2x32xf32>
    %24 = arith.truncf %18 : vector<2x32xf32> to vector<2x32xbf16>
    %c0_27 = arith.constant 0 : index
    %c0_28 = arith.constant 0 : index
    %25 = vector.load %arg15[%c0_27, %c0_28] : memref<16x128xf32, #tpu.memory_space<vmem>>, vector<2x128xf32>
    %cst_29 = arith.constant dense<0.000000e+00> : vector<2x128xf32>
    %26 = tpu.matmul %24, %3, %cst_29 {dimension_numbers = #tpu.dot_dimension_numbers<[1], [0], [0], [1], [0, 0, 1, 1], [], []>} : vector<2x32xbf16>, vector<32x128xbf16>, vector<2x128xf32> -> vector<2x128xf32>
    %27 = arith.addf %25, %26 : vector<2x128xf32>
    %28 = arith.negf %27 : vector<2x128xf32>
    %29 = math.exp %28 : vector<2x128xf32>
    %cst_30 = arith.constant 1.000000e+00 : f32
    %30 = vector.broadcast %cst_30 : f32 to vector<2x128xf32>
    %31 = arith.addf %30, %29 : vector<2x128xf32>
    %32 = arith.divf %30, %31 : vector<2x128xf32>
    %33 = math.tanh %27 : vector<2x128xf32>
    %34 = vector.extract_strided_slice %32 {offsets = [0, 0], sizes = [2, 32], strides = [1, 1]} : vector<2x128xf32> to vector<2x32xf32>
    %35 = vector.extract_strided_slice %32 {offsets = [0, 32], sizes = [2, 32], strides = [1, 1]} : vector<2x128xf32> to vector<2x32xf32>
    %36 = vector.extract_strided_slice %33 {offsets = [0, 64], sizes = [2, 32], strides = [1, 1]} : vector<2x128xf32> to vector<2x32xf32>
    %37 = vector.extract_strided_slice %32 {offsets = [0, 96], sizes = [2, 32], strides = [1, 1]} : vector<2x128xf32> to vector<2x32xf32>
    %38 = arith.mulf %35, %21 : vector<2x32xf32>
    %39 = arith.mulf %34, %36 : vector<2x32xf32>
    %40 = arith.addf %38, %39 : vector<2x32xf32>
    %41 = math.tanh %40 : vector<2x32xf32>
    %42 = arith.mulf %37, %41 : vector<2x32xf32>
    %43 = arith.truncf %42 : vector<2x32xf32> to vector<2x32xbf16>
    %44 = arith.truncf %42 : vector<2x32xf32> to vector<2x32xbf16>
    %c2 = arith.constant 2 : index
    %c0_31 = arith.constant 0 : index
    %45 = vector.load %arg15[%c2, %c0_31] : memref<16x128xf32, #tpu.memory_space<vmem>>, vector<2x128xf32>
    %cst_32 = arith.constant dense<0.000000e+00> : vector<2x128xf32>
    %46 = tpu.matmul %44, %3, %cst_32 {dimension_numbers = #tpu.dot_dimension_numbers<[1], [0], [0], [1], [0, 0, 1, 1], [], []>} : vector<2x32xbf16>, vector<32x128xbf16>, vector<2x128xf32> -> vector<2x128xf32>
    %47 = arith.addf %45, %46 : vector<2x128xf32>
    %48 = arith.negf %47 : vector<2x128xf32>
    %49 = math.exp %48 : vector<2x128xf32>
    %cst_33 = arith.constant 1.000000e+00 : f32
    %50 = vector.broadcast %cst_33 : f32 to vector<2x128xf32>
    %51 = arith.addf %50, %49 : vector<2x128xf32>
    %52 = arith.divf %50, %51 : vector<2x128xf32>
    %53 = math.tanh %47 : vector<2x128xf32>
    %54 = vector.extract_strided_slice %52 {offsets = [0, 0], sizes = [2, 32], strides = [1, 1]} : vector<2x128xf32> to vector<2x32xf32>
    %55 = vector.extract_strided_slice %52 {offsets = [0, 32], sizes = [2, 32], strides = [1, 1]} : vector<2x128xf32> to vector<2x32xf32>
    %56 = vector.extract_strided_slice %53 {offsets = [0, 64], sizes = [2, 32], strides = [1, 1]} : vector<2x128xf32> to vector<2x32xf32>
    %57 = vector.extract_strided_slice %52 {offsets = [0, 96], sizes = [2, 32], strides = [1, 1]} : vector<2x128xf32> to vector<2x32xf32>
    %58 = arith.mulf %55, %40 : vector<2x32xf32>
    %59 = arith.mulf %54, %56 : vector<2x32xf32>
    %60 = arith.addf %58, %59 : vector<2x32xf32>
    %61 = math.tanh %60 : vector<2x32xf32>
    %62 = arith.mulf %57, %61 : vector<2x32xf32>
    %63 = arith.truncf %62 : vector<2x32xf32> to vector<2x32xbf16>
    %64 = arith.truncf %19 : vector<2x32xf32> to vector<2x32xbf16>
    %cst_34 = arith.constant dense<0.000000e+00> : vector<2x128xf32>
    %65 = tpu.matmul %43, %1, %cst_34 {dimension_numbers = #tpu.dot_dimension_numbers<[1], [0], [0], [1], [0, 0, 1, 1], [], []>} : vector<2x32xbf16>, vector<32x128xbf16>, vector<2x128xf32> -> vector<2x128xf32>
    %cst_35 = arith.constant dense<0.000000e+00> : vector<2x128xf32>
    %66 = tpu.matmul %64, %4, %cst_35 {dimension_numbers = #tpu.dot_dimension_numbers<[1], [0], [0], [1], [0, 0, 1, 1], [], []>} : vector<2x32xbf16>, vector<32x128xbf16>, vector<2x128xf32> -> vector<2x128xf32>
    %67 = arith.addf %65, %66 : vector<2x128xf32>
    %68 = arith.addf %67, %8 : vector<2x128xf32>
    %69 = arith.negf %68 : vector<2x128xf32>
    %70 = math.exp %69 : vector<2x128xf32>
    %cst_36 = arith.constant 1.000000e+00 : f32
    %71 = vector.broadcast %cst_36 : f32 to vector<2x128xf32>
    %72 = arith.addf %71, %70 : vector<2x128xf32>
    %73 = arith.divf %71, %72 : vector<2x128xf32>
    %74 = math.tanh %68 : vector<2x128xf32>
    %75 = vector.extract_strided_slice %73 {offsets = [0, 0], sizes = [2, 32], strides = [1, 1]} : vector<2x128xf32> to vector<2x32xf32>
    %76 = vector.extract_strided_slice %73 {offsets = [0, 32], sizes = [2, 32], strides = [1, 1]} : vector<2x128xf32> to vector<2x32xf32>
    %77 = vector.extract_strided_slice %74 {offsets = [0, 64], sizes = [2, 32], strides = [1, 1]} : vector<2x128xf32> to vector<2x32xf32>
    %78 = vector.extract_strided_slice %73 {offsets = [0, 96], sizes = [2, 32], strides = [1, 1]} : vector<2x128xf32> to vector<2x32xf32>
    %79 = arith.mulf %76, %22 : vector<2x32xf32>
    %80 = arith.mulf %75, %77 : vector<2x32xf32>
    %81 = arith.addf %79, %80 : vector<2x32xf32>
    %82 = math.tanh %81 : vector<2x32xf32>
    %83 = arith.mulf %78, %82 : vector<2x32xf32>
    %84 = arith.truncf %83 : vector<2x32xf32> to vector<2x32xbf16>
    %85 = arith.truncf %62 : vector<2x32xf32> to vector<2x32xbf16>
    %c4 = arith.constant 4 : index
    %c0_37 = arith.constant 0 : index
    %86 = vector.load %arg15[%c4, %c0_37] : memref<16x128xf32, #tpu.memory_space<vmem>>, vector<2x128xf32>
    %cst_38 = arith.constant dense<0.000000e+00> : vector<2x128xf32>
    %87 = tpu.matmul %85, %3, %cst_38 {dimension_numbers = #tpu.dot_dimension_numbers<[1], [0], [0], [1], [0, 0, 1, 1], [], []>} : vector<2x32xbf16>, vector<32x128xbf16>, vector<2x128xf32> -> vector<2x128xf32>
    %88 = arith.addf %86, %87 : vector<2x128xf32>
    %89 = arith.negf %88 : vector<2x128xf32>
    %90 = math.exp %89 : vector<2x128xf32>
    %cst_39 = arith.constant 1.000000e+00 : f32
    %91 = vector.broadcast %cst_39 : f32 to vector<2x128xf32>
    %92 = arith.addf %91, %90 : vector<2x128xf32>
    %93 = arith.divf %91, %92 : vector<2x128xf32>
    %94 = math.tanh %88 : vector<2x128xf32>
    %95 = vector.extract_strided_slice %93 {offsets = [0, 0], sizes = [2, 32], strides = [1, 1]} : vector<2x128xf32> to vector<2x32xf32>
    %96 = vector.extract_strided_slice %93 {offsets = [0, 32], sizes = [2, 32], strides = [1, 1]} : vector<2x128xf32> to vector<2x32xf32>
    %97 = vector.extract_strided_slice %94 {offsets = [0, 64], sizes = [2, 32], strides = [1, 1]} : vector<2x128xf32> to vector<2x32xf32>
    %98 = vector.extract_strided_slice %93 {offsets = [0, 96], sizes = [2, 32], strides = [1, 1]} : vector<2x128xf32> to vector<2x32xf32>
    %99 = arith.mulf %96, %60 : vector<2x32xf32>
    %100 = arith.mulf %95, %97 : vector<2x32xf32>
    %101 = arith.addf %99, %100 : vector<2x32xf32>
    %102 = math.tanh %101 : vector<2x32xf32>
    %103 = arith.mulf %98, %102 : vector<2x32xf32>
    %104 = arith.truncf %103 : vector<2x32xf32> to vector<2x32xbf16>
    %105 = arith.truncf %83 : vector<2x32xf32> to vector<2x32xbf16>
    %cst_40 = arith.constant dense<0.000000e+00> : vector<2x128xf32>
    %106 = tpu.matmul %63, %1, %cst_40 {dimension_numbers = #tpu.dot_dimension_numbers<[1], [0], [0], [1], [0, 0, 1, 1], [], []>} : vector<2x32xbf16>, vector<32x128xbf16>, vector<2x128xf32> -> vector<2x128xf32>
    %cst_41 = arith.constant dense<0.000000e+00> : vector<2x128xf32>
    %107 = tpu.matmul %105, %4, %cst_41 {dimension_numbers = #tpu.dot_dimension_numbers<[1], [0], [0], [1], [0, 0, 1, 1], [], []>} : vector<2x32xbf16>, vector<32x128xbf16>, vector<2x128xf32> -> vector<2x128xf32>
    %108 = arith.addf %106, %107 : vector<2x128xf32>
    %109 = arith.addf %108, %8 : vector<2x128xf32>
    %110 = arith.negf %109 : vector<2x128xf32>
    %111 = math.exp %110 : vector<2x128xf32>
    %cst_42 = arith.constant 1.000000e+00 : f32
    %112 = vector.broadcast %cst_42 : f32 to vector<2x128xf32>
    %113 = arith.addf %112, %111 : vector<2x128xf32>
    %114 = arith.divf %112, %113 : vector<2x128xf32>
    %115 = math.tanh %109 : vector<2x128xf32>
    %116 = vector.extract_strided_slice %114 {offsets = [0, 0], sizes = [2, 32], strides = [1, 1]} : vector<2x128xf32> to vector<2x32xf32>
    %117 = vector.extract_strided_slice %114 {offsets = [0, 32], sizes = [2, 32], strides = [1, 1]} : vector<2x128xf32> to vector<2x32xf32>
    %118 = vector.extract_strided_slice %115 {offsets = [0, 64], sizes = [2, 32], strides = [1, 1]} : vector<2x128xf32> to vector<2x32xf32>
    %119 = vector.extract_strided_slice %114 {offsets = [0, 96], sizes = [2, 32], strides = [1, 1]} : vector<2x128xf32> to vector<2x32xf32>
    %120 = arith.mulf %117, %81 : vector<2x32xf32>
    %121 = arith.mulf %116, %118 : vector<2x32xf32>
    %122 = arith.addf %120, %121 : vector<2x32xf32>
    %123 = math.tanh %122 : vector<2x32xf32>
    %124 = arith.mulf %119, %123 : vector<2x32xf32>
    %125 = arith.truncf %124 : vector<2x32xf32> to vector<2x32xbf16>
    %126 = arith.truncf %20 : vector<2x32xf32> to vector<2x32xbf16>
    %cst_43 = arith.constant dense<0.000000e+00> : vector<2x128xf32>
    %127 = tpu.matmul %84, %2, %cst_43 {dimension_numbers = #tpu.dot_dimension_numbers<[1], [0], [0], [1], [0, 0, 1, 1], [], []>} : vector<2x32xbf16>, vector<32x128xbf16>, vector<2x128xf32> -> vector<2x128xf32>
    %cst_44 = arith.constant dense<0.000000e+00> : vector<2x128xf32>
    %128 = tpu.matmul %126, %5, %cst_44 {dimension_numbers = #tpu.dot_dimension_numbers<[1], [0], [0], [1], [0, 0, 1, 1], [], []>} : vector<2x32xbf16>, vector<32x128xbf16>, vector<2x128xf32> -> vector<2x128xf32>
    %129 = arith.addf %127, %128 : vector<2x128xf32>
    %130 = arith.addf %129, %11 : vector<2x128xf32>
    %131 = arith.negf %130 : vector<2x128xf32>
    %132 = math.exp %131 : vector<2x128xf32>
    %cst_45 = arith.constant 1.000000e+00 : f32
    %133 = vector.broadcast %cst_45 : f32 to vector<2x128xf32>
    %134 = arith.addf %133, %132 : vector<2x128xf32>
    %135 = arith.divf %133, %134 : vector<2x128xf32>
    %136 = math.tanh %130 : vector<2x128xf32>
    %137 = vector.extract_strided_slice %135 {offsets = [0, 0], sizes = [2, 32], strides = [1, 1]} : vector<2x128xf32> to vector<2x32xf32>
    %138 = vector.extract_strided_slice %135 {offsets = [0, 32], sizes = [2, 32], strides = [1, 1]} : vector<2x128xf32> to vector<2x32xf32>
    %139 = vector.extract_strided_slice %136 {offsets = [0, 64], sizes = [2, 32], strides = [1, 1]} : vector<2x128xf32> to vector<2x32xf32>
    %140 = vector.extract_strided_slice %135 {offsets = [0, 96], sizes = [2, 32], strides = [1, 1]} : vector<2x128xf32> to vector<2x32xf32>
    %141 = arith.mulf %138, %23 : vector<2x32xf32>
    %142 = arith.mulf %137, %139 : vector<2x32xf32>
    %143 = arith.addf %141, %142 : vector<2x32xf32>
    %144 = math.tanh %143 : vector<2x32xf32>
    %145 = arith.mulf %140, %144 : vector<2x32xf32>
    %c0_46 = arith.constant 0 : index
    %c0_47 = arith.constant 0 : index
    %146 = vector.load %arg16[%c0_46, %c0_47] : memref<16x32xf32, #tpu.memory_space<vmem>>, vector<2x32xf32>
    tpu.vector_store %arg16[%c0_46, %c0_47], %145 {strides = array<i32>} : memref<16x32xf32, #tpu.memory_space<vmem>>, vector<2x32xf32>,
    %147 = arith.truncf %103 : vector<2x32xf32> to vector<2x32xbf16>
    %c6 = arith.constant 6 : index
    %c0_48 = arith.constant 0 : index
    %148 = vector.load %arg15[%c6, %c0_48] : memref<16x128xf32, #tpu.memory_space<vmem>>, vector<2x128xf32>
    %cst_49 = arith.constant dense<0.000000e+00> : vector<2x128xf32>
    %149 = tpu.matmul %147, %3, %cst_49 {dimension_numbers = #tpu.dot_dimension_numbers<[1], [0], [0], [1], [0, 0, 1, 1], [], []>} : vector<2x32xbf16>, vector<32x128xbf16>, vector<2x128xf32> -> vector<2x128xf32>
    %150 = arith.addf %148, %149 : vector<2x128xf32>
    %151 = arith.negf %150 : vector<2x128xf32>
    %152 = math.exp %151 : vector<2x128xf32>
    %cst_50 = arith.constant 1.000000e+00 : f32
    %153 = vector.broadcast %cst_50 : f32 to vector<2x128xf32>
    %154 = arith.addf %153, %152 : vector<2x128xf32>
    %155 = arith.divf %153, %154 : vector<2x128xf32>
    %156 = math.tanh %150 : vector<2x128xf32>
    %157 = vector.extract_strided_slice %155 {offsets = [0, 0], sizes = [2, 32], strides = [1, 1]} : vector<2x128xf32> to vector<2x32xf32>
    %158 = vector.extract_strided_slice %155 {offsets = [0, 32], sizes = [2, 32], strides = [1, 1]} : vector<2x128xf32> to vector<2x32xf32>
    %159 = vector.extract_strided_slice %156 {offsets = [0, 64], sizes = [2, 32], strides = [1, 1]} : vector<2x128xf32> to vector<2x32xf32>
    %160 = vector.extract_strided_slice %155 {offsets = [0, 96], sizes = [2, 32], strides = [1, 1]} : vector<2x128xf32> to vector<2x32xf32>
    %161 = arith.mulf %158, %101 : vector<2x32xf32>
    %162 = arith.mulf %157, %159 : vector<2x32xf32>
    %163 = arith.addf %161, %162 : vector<2x32xf32>
    %164 = math.tanh %163 : vector<2x32xf32>
    %165 = arith.mulf %160, %164 : vector<2x32xf32>
    %166 = arith.truncf %165 : vector<2x32xf32> to vector<2x32xbf16>
    %167 = arith.truncf %124 : vector<2x32xf32> to vector<2x32xbf16>
    %cst_51 = arith.constant dense<0.000000e+00> : vector<2x128xf32>
    %168 = tpu.matmul %104, %1, %cst_51 {dimension_numbers = #tpu.dot_dimension_numbers<[1], [0], [0], [1], [0, 0, 1, 1], [], []>} : vector<2x32xbf16>, vector<32x128xbf16>, vector<2x128xf32> -> vector<2x128xf32>
    %cst_52 = arith.constant dense<0.000000e+00> : vector<2x128xf32>
    %169 = tpu.matmul %167, %4, %cst_52 {dimension_numbers = #tpu.dot_dimension_numbers<[1], [0], [0], [1], [0, 0, 1, 1], [], []>} : vector<2x32xbf16>, vector<32x128xbf16>, vector<2x128xf32> -> vector<2x128xf32>
    %170 = arith.addf %168, %169 : vector<2x128xf32>
    %171 = arith.addf %170, %8 : vector<2x128xf32>
    %172 = arith.negf %171 : vector<2x128xf32>
    %173 = math.exp %172 : vector<2x128xf32>
    %cst_53 = arith.constant 1.000000e+00 : f32
    %174 = vector.broadcast %cst_53 : f32 to vector<2x128xf32>
    %175 = arith.addf %174, %173 : vector<2x128xf32>
    %176 = arith.divf %174, %175 : vector<2x128xf32>
    %177 = math.tanh %171 : vector<2x128xf32>
    %178 = vector.extract_strided_slice %176 {offsets = [0, 0], sizes = [2, 32], strides = [1, 1]} : vector<2x128xf32> to vector<2x32xf32>
    %179 = vector.extract_strided_slice %176 {offsets = [0, 32], sizes = [2, 32], strides = [1, 1]} : vector<2x128xf32> to vector<2x32xf32>
    %180 = vector.extract_strided_slice %177 {offsets = [0, 64], sizes = [2, 32], strides = [1, 1]} : vector<2x128xf32> to vector<2x32xf32>
    %181 = vector.extract_strided_slice %176 {offsets = [0, 96], sizes = [2, 32], strides = [1, 1]} : vector<2x128xf32> to vector<2x32xf32>
    %182 = arith.mulf %179, %122 : vector<2x32xf32>
    %183 = arith.mulf %178, %180 : vector<2x32xf32>
    %184 = arith.addf %182, %183 : vector<2x32xf32>
    %185 = math.tanh %184 : vector<2x32xf32>
    %186 = arith.mulf %181, %185 : vector<2x32xf32>
    %187 = arith.truncf %186 : vector<2x32xf32> to vector<2x32xbf16>
    %188 = arith.truncf %145 : vector<2x32xf32> to vector<2x32xbf16>
    %cst_54 = arith.constant dense<0.000000e+00> : vector<2x128xf32>
    %189 = tpu.matmul %125, %2, %cst_54 {dimension_numbers = #tpu.dot_dimension_numbers<[1], [0], [0], [1], [0, 0, 1, 1], [], []>} : vector<2x32xbf16>, vector<32x128xbf16>, vector<2x128xf32> -> vector<2x128xf32>
    %cst_55 = arith.constant dense<0.000000e+00> : vector<2x128xf32>
    %190 = tpu.matmul %188, %5, %cst_55 {dimension_numbers = #tpu.dot_dimension_numbers<[1], [0], [0], [1], [0, 0, 1, 1], [], []>} : vector<2x32xbf16>, vector<32x128xbf16>, vector<2x128xf32> -> vector<2x128xf32>
    %191 = arith.addf %189, %190 : vector<2x128xf32>
    %192 = arith.addf %191, %11 : vector<2x128xf32>
    %193 = arith.negf %192 : vector<2x128xf32>
    %194 = math.exp %193 : vector<2x128xf32>
    %cst_56 = arith.constant 1.000000e+00 : f32
    %195 = vector.broadcast %cst_56 : f32 to vector<2x128xf32>
    %196 = arith.addf %195, %194 : vector<2x128xf32>
    %197 = arith.divf %195, %196 : vector<2x128xf32>
    %198 = math.tanh %192 : vector<2x128xf32>
    %199 = vector.extract_strided_slice %197 {offsets = [0, 0], sizes = [2, 32], strides = [1, 1]} : vector<2x128xf32> to vector<2x32xf32>
    %200 = vector.extract_strided_slice %197 {offsets = [0, 32], sizes = [2, 32], strides = [1, 1]} : vector<2x128xf32> to vector<2x32xf32>
    %201 = vector.extract_strided_slice %198 {offsets = [0, 64], sizes = [2, 32], strides = [1, 1]} : vector<2x128xf32> to vector<2x32xf32>
    %202 = vector.extract_strided_slice %197 {offsets = [0, 96], sizes = [2, 32], strides = [1, 1]} : vector<2x128xf32> to vector<2x32xf32>
    %203 = arith.mulf %200, %143 : vector<2x32xf32>
    %204 = arith.mulf %199, %201 : vector<2x32xf32>
    %205 = arith.addf %203, %204 : vector<2x32xf32>
    %206 = math.tanh %205 : vector<2x32xf32>
    %207 = arith.mulf %202, %206 : vector<2x32xf32>
    %c2_57 = arith.constant 2 : index
    %c0_58 = arith.constant 0 : index
    %208 = vector.load %arg16[%c2_57, %c0_58] : memref<16x32xf32, #tpu.memory_space<vmem>>, vector<2x32xf32>
    tpu.vector_store %arg16[%c2_57, %c0_58], %207 {strides = array<i32>} : memref<16x32xf32, #tpu.memory_space<vmem>>, vector<2x32xf32>,
    %209 = arith.truncf %165 : vector<2x32xf32> to vector<2x32xbf16>
    %c8 = arith.constant 8 : index
    %c0_59 = arith.constant 0 : index
    %210 = vector.load %arg15[%c8, %c0_59] : memref<16x128xf32, #tpu.memory_space<vmem>>, vector<2x128xf32>
    %cst_60 = arith.constant dense<0.000000e+00> : vector<2x128xf32>
    %211 = tpu.matmul %209, %3, %cst_60 {dimension_numbers = #tpu.dot_dimension_numbers<[1], [0], [0], [1], [0, 0, 1, 1], [], []>} : vector<2x32xbf16>, vector<32x128xbf16>, vector<2x128xf32> -> vector<2x128xf32>
    %212 = arith.addf %210, %211 : vector<2x128xf32>
    %213 = arith.negf %212 : vector<2x128xf32>
    %214 = math.exp %213 : vector<2x128xf32>
    %cst_61 = arith.constant 1.000000e+00 : f32
    %215 = vector.broadcast %cst_61 : f32 to vector<2x128xf32>
    %216 = arith.addf %215, %214 : vector<2x128xf32>
    %217 = arith.divf %215, %216 : vector<2x128xf32>
    %218 = math.tanh %212 : vector<2x128xf32>
    %219 = vector.extract_strided_slice %217 {offsets = [0, 0], sizes = [2, 32], strides = [1, 1]} : vector<2x128xf32> to vector<2x32xf32>
    %220 = vector.extract_strided_slice %217 {offsets = [0, 32], sizes = [2, 32], strides = [1, 1]} : vector<2x128xf32> to vector<2x32xf32>
    %221 = vector.extract_strided_slice %218 {offsets = [0, 64], sizes = [2, 32], strides = [1, 1]} : vector<2x128xf32> to vector<2x32xf32>
    %222 = vector.extract_strided_slice %217 {offsets = [0, 96], sizes = [2, 32], strides = [1, 1]} : vector<2x128xf32> to vector<2x32xf32>
    %223 = arith.mulf %220, %163 : vector<2x32xf32>
    %224 = arith.mulf %219, %221 : vector<2x32xf32>
    %225 = arith.addf %223, %224 : vector<2x32xf32>
    %226 = math.tanh %225 : vector<2x32xf32>
    %227 = arith.mulf %222, %226 : vector<2x32xf32>
    %228 = arith.truncf %227 : vector<2x32xf32> to vector<2x32xbf16>
    %229 = arith.truncf %186 : vector<2x32xf32> to vector<2x32xbf16>
    %cst_62 = arith.constant dense<0.000000e+00> : vector<2x128xf32>
    %230 = tpu.matmul %166, %1, %cst_62 {dimension_numbers = #tpu.dot_dimension_numbers<[1], [0], [0], [1], [0, 0, 1, 1], [], []>} : vector<2x32xbf16>, vector<32x128xbf16>, vector<2x128xf32> -> vector<2x128xf32>
    %cst_63 = arith.constant dense<0.000000e+00> : vector<2x128xf32>
    %231 = tpu.matmul %229, %4, %cst_63 {dimension_numbers = #tpu.dot_dimension_numbers<[1], [0], [0], [1], [0, 0, 1, 1], [], []>} : vector<2x32xbf16>, vector<32x128xbf16>, vector<2x128xf32> -> vector<2x128xf32>
    %232 = arith.addf %230, %231 : vector<2x128xf32>
    %233 = arith.addf %232, %8 : vector<2x128xf32>
    %234 = arith.negf %233 : vector<2x128xf32>
    %235 = math.exp %234 : vector<2x128xf32>
    %cst_64 = arith.constant 1.000000e+00 : f32
    %236 = vector.broadcast %cst_64 : f32 to vector<2x128xf32>
    %237 = arith.addf %236, %235 : vector<2x128xf32>
    %238 = arith.divf %236, %237 : vector<2x128xf32>
    %239 = math.tanh %233 : vector<2x128xf32>
    %240 = vector.extract_strided_slice %238 {offsets = [0, 0], sizes = [2, 32], strides = [1, 1]} : vector<2x128xf32> to vector<2x32xf32>
    %241 = vector.extract_strided_slice %238 {offsets = [0, 32], sizes = [2, 32], strides = [1, 1]} : vector<2x128xf32> to vector<2x32xf32>
    %242 = vector.extract_strided_slice %239 {offsets = [0, 64], sizes = [2, 32], strides = [1, 1]} : vector<2x128xf32> to vector<2x32xf32>
    %243 = vector.extract_strided_slice %238 {offsets = [0, 96], sizes = [2, 32], strides = [1, 1]} : vector<2x128xf32> to vector<2x32xf32>
    %244 = arith.mulf %241, %184 : vector<2x32xf32>
    %245 = arith.mulf %240, %242 : vector<2x32xf32>
    %246 = arith.addf %244, %245 : vector<2x32xf32>
    %247 = math.tanh %246 : vector<2x32xf32>
    %248 = arith.mulf %243, %247 : vector<2x32xf32>
    %249 = arith.truncf %248 : vector<2x32xf32> to vector<2x32xbf16>
    %250 = arith.truncf %207 : vector<2x32xf32> to vector<2x32xbf16>
    %cst_65 = arith.constant dense<0.000000e+00> : vector<2x128xf32>
    %251 = tpu.matmul %187, %2, %cst_65 {dimension_numbers = #tpu.dot_dimension_numbers<[1], [0], [0], [1], [0, 0, 1, 1], [], []>} : vector<2x32xbf16>, vector<32x128xbf16>, vector<2x128xf32> -> vector<2x128xf32>
    %cst_66 = arith.constant dense<0.000000e+00> : vector<2x128xf32>
    %252 = tpu.matmul %250, %5, %cst_66 {dimension_numbers = #tpu.dot_dimension_numbers<[1], [0], [0], [1], [0, 0, 1, 1], [], []>} : vector<2x32xbf16>, vector<32x128xbf16>, vector<2x128xf32> -> vector<2x128xf32>
    %253 = arith.addf %251, %252 : vector<2x128xf32>
    %254 = arith.addf %253, %11 : vector<2x128xf32>
    %255 = arith.negf %254 : vector<2x128xf32>
    %256 = math.exp %255 : vector<2x128xf32>
    %cst_67 = arith.constant 1.000000e+00 : f32
    %257 = vector.broadcast %cst_67 : f32 to vector<2x128xf32>
    %258 = arith.addf %257, %256 : vector<2x128xf32>
    %259 = arith.divf %257, %258 : vector<2x128xf32>
    %260 = math.tanh %254 : vector<2x128xf32>
    %261 = vector.extract_strided_slice %259 {offsets = [0, 0], sizes = [2, 32], strides = [1, 1]} : vector<2x128xf32> to vector<2x32xf32>
    %262 = vector.extract_strided_slice %259 {offsets = [0, 32], sizes = [2, 32], strides = [1, 1]} : vector<2x128xf32> to vector<2x32xf32>
    %263 = vector.extract_strided_slice %260 {offsets = [0, 64], sizes = [2, 32], strides = [1, 1]} : vector<2x128xf32> to vector<2x32xf32>
    %264 = vector.extract_strided_slice %259 {offsets = [0, 96], sizes = [2, 32], strides = [1, 1]} : vector<2x128xf32> to vector<2x32xf32>
    %265 = arith.mulf %262, %205 : vector<2x32xf32>
    %266 = arith.mulf %261, %263 : vector<2x32xf32>
    %267 = arith.addf %265, %266 : vector<2x32xf32>
    %268 = math.tanh %267 : vector<2x32xf32>
    %269 = arith.mulf %264, %268 : vector<2x32xf32>
    %c4_68 = arith.constant 4 : index
    %c0_69 = arith.constant 0 : index
    %270 = vector.load %arg16[%c4_68, %c0_69] : memref<16x32xf32, #tpu.memory_space<vmem>>, vector<2x32xf32>
    tpu.vector_store %arg16[%c4_68, %c0_69], %269 {strides = array<i32>} : memref<16x32xf32, #tpu.memory_space<vmem>>, vector<2x32xf32>,
    %271 = arith.truncf %227 : vector<2x32xf32> to vector<2x32xbf16>
    %c10 = arith.constant 10 : index
    %c0_70 = arith.constant 0 : index
    %272 = vector.load %arg15[%c10, %c0_70] : memref<16x128xf32, #tpu.memory_space<vmem>>, vector<2x128xf32>
    %cst_71 = arith.constant dense<0.000000e+00> : vector<2x128xf32>
    %273 = tpu.matmul %271, %3, %cst_71 {dimension_numbers = #tpu.dot_dimension_numbers<[1], [0], [0], [1], [0, 0, 1, 1], [], []>} : vector<2x32xbf16>, vector<32x128xbf16>, vector<2x128xf32> -> vector<2x128xf32>
    %274 = arith.addf %272, %273 : vector<2x128xf32>
    %275 = arith.negf %274 : vector<2x128xf32>
    %276 = math.exp %275 : vector<2x128xf32>
    %cst_72 = arith.constant 1.000000e+00 : f32
    %277 = vector.broadcast %cst_72 : f32 to vector<2x128xf32>
    %278 = arith.addf %277, %276 : vector<2x128xf32>
    %279 = arith.divf %277, %278 : vector<2x128xf32>
    %280 = math.tanh %274 : vector<2x128xf32>
    %281 = vector.extract_strided_slice %279 {offsets = [0, 0], sizes = [2, 32], strides = [1, 1]} : vector<2x128xf32> to vector<2x32xf32>
    %282 = vector.extract_strided_slice %279 {offsets = [0, 32], sizes = [2, 32], strides = [1, 1]} : vector<2x128xf32> to vector<2x32xf32>
    %283 = vector.extract_strided_slice %280 {offsets = [0, 64], sizes = [2, 32], strides = [1, 1]} : vector<2x128xf32> to vector<2x32xf32>
    %284 = vector.extract_strided_slice %279 {offsets = [0, 96], sizes = [2, 32], strides = [1, 1]} : vector<2x128xf32> to vector<2x32xf32>
    %285 = arith.mulf %282, %225 : vector<2x32xf32>
    %286 = arith.mulf %281, %283 : vector<2x32xf32>
    %287 = arith.addf %285, %286 : vector<2x32xf32>
    %288 = math.tanh %287 : vector<2x32xf32>
    %289 = arith.mulf %284, %288 : vector<2x32xf32>
    %290 = arith.truncf %289 : vector<2x32xf32> to vector<2x32xbf16>
    %291 = arith.truncf %248 : vector<2x32xf32> to vector<2x32xbf16>
    %cst_73 = arith.constant dense<0.000000e+00> : vector<2x128xf32>
    %292 = tpu.matmul %228, %1, %cst_73 {dimension_numbers = #tpu.dot_dimension_numbers<[1], [0], [0], [1], [0, 0, 1, 1], [], []>} : vector<2x32xbf16>, vector<32x128xbf16>, vector<2x128xf32> -> vector<2x128xf32>
    %cst_74 = arith.constant dense<0.000000e+00> : vector<2x128xf32>
    %293 = tpu.matmul %291, %4, %cst_74 {dimension_numbers = #tpu.dot_dimension_numbers<[1], [0], [0], [1], [0, 0, 1, 1], [], []>} : vector<2x32xbf16>, vector<32x128xbf16>, vector<2x128xf32> -> vector<2x128xf32>
    %294 = arith.addf %292, %293 : vector<2x128xf32>
    %295 = arith.addf %294, %8 : vector<2x128xf32>
    %296 = arith.negf %295 : vector<2x128xf32>
    %297 = math.exp %296 : vector<2x128xf32>
    %cst_75 = arith.constant 1.000000e+00 : f32
    %298 = vector.broadcast %cst_75 : f32 to vector<2x128xf32>
    %299 = arith.addf %298, %297 : vector<2x128xf32>
    %300 = arith.divf %298, %299 : vector<2x128xf32>
    %301 = math.tanh %295 : vector<2x128xf32>
    %302 = vector.extract_strided_slice %300 {offsets = [0, 0], sizes = [2, 32], strides = [1, 1]} : vector<2x128xf32> to vector<2x32xf32>
    %303 = vector.extract_strided_slice %300 {offsets = [0, 32], sizes = [2, 32], strides = [1, 1]} : vector<2x128xf32> to vector<2x32xf32>
    %304 = vector.extract_strided_slice %301 {offsets = [0, 64], sizes = [2, 32], strides = [1, 1]} : vector<2x128xf32> to vector<2x32xf32>
    %305 = vector.extract_strided_slice %300 {offsets = [0, 96], sizes = [2, 32], strides = [1, 1]} : vector<2x128xf32> to vector<2x32xf32>
    %306 = arith.mulf %303, %246 : vector<2x32xf32>
    %307 = arith.mulf %302, %304 : vector<2x32xf32>
    %308 = arith.addf %306, %307 : vector<2x32xf32>
    %309 = math.tanh %308 : vector<2x32xf32>
    %310 = arith.mulf %305, %309 : vector<2x32xf32>
    %311 = arith.truncf %310 : vector<2x32xf32> to vector<2x32xbf16>
    %312 = arith.truncf %269 : vector<2x32xf32> to vector<2x32xbf16>
    %cst_76 = arith.constant dense<0.000000e+00> : vector<2x128xf32>
    %313 = tpu.matmul %249, %2, %cst_76 {dimension_numbers = #tpu.dot_dimension_numbers<[1], [0], [0], [1], [0, 0, 1, 1], [], []>} : vector<2x32xbf16>, vector<32x128xbf16>, vector<2x128xf32> -> vector<2x128xf32>
    %cst_77 = arith.constant dense<0.000000e+00> : vector<2x128xf32>
    %314 = tpu.matmul %312, %5, %cst_77 {dimension_numbers = #tpu.dot_dimension_numbers<[1], [0], [0], [1], [0, 0, 1, 1], [], []>} : vector<2x32xbf16>, vector<32x128xbf16>, vector<2x128xf32> -> vector<2x128xf32>
    %315 = arith.addf %313, %314 : vector<2x128xf32>
    %316 = arith.addf %315, %11 : vector<2x128xf32>
    %317 = arith.negf %316 : vector<2x128xf32>
    %318 = math.exp %317 : vector<2x128xf32>
    %cst_78 = arith.constant 1.000000e+00 : f32
    %319 = vector.broadcast %cst_78 : f32 to vector<2x128xf32>
    %320 = arith.addf %319, %318 : vector<2x128xf32>
    %321 = arith.divf %319, %320 : vector<2x128xf32>
    %322 = math.tanh %316 : vector<2x128xf32>
    %323 = vector.extract_strided_slice %321 {offsets = [0, 0], sizes = [2, 32], strides = [1, 1]} : vector<2x128xf32> to vector<2x32xf32>
    %324 = vector.extract_strided_slice %321 {offsets = [0, 32], sizes = [2, 32], strides = [1, 1]} : vector<2x128xf32> to vector<2x32xf32>
    %325 = vector.extract_strided_slice %322 {offsets = [0, 64], sizes = [2, 32], strides = [1, 1]} : vector<2x128xf32> to vector<2x32xf32>
    %326 = vector.extract_strided_slice %321 {offsets = [0, 96], sizes = [2, 32], strides = [1, 1]} : vector<2x128xf32> to vector<2x32xf32>
    %327 = arith.mulf %324, %267 : vector<2x32xf32>
    %328 = arith.mulf %323, %325 : vector<2x32xf32>
    %329 = arith.addf %327, %328 : vector<2x32xf32>
    %330 = math.tanh %329 : vector<2x32xf32>
    %331 = arith.mulf %326, %330 : vector<2x32xf32>
    %c6_79 = arith.constant 6 : index
    %c0_80 = arith.constant 0 : index
    %332 = vector.load %arg16[%c6_79, %c0_80] : memref<16x32xf32, #tpu.memory_space<vmem>>, vector<2x32xf32>
    tpu.vector_store %arg16[%c6_79, %c0_80], %331 {strides = array<i32>} : memref<16x32xf32, #tpu.memory_space<vmem>>, vector<2x32xf32>,
    %333 = arith.truncf %289 : vector<2x32xf32> to vector<2x32xbf16>
    %c12 = arith.constant 12 : index
    %c0_81 = arith.constant 0 : index
    %334 = vector.load %arg15[%c12, %c0_81] : memref<16x128xf32, #tpu.memory_space<vmem>>, vector<2x128xf32>
    %cst_82 = arith.constant dense<0.000000e+00> : vector<2x128xf32>
    %335 = tpu.matmul %333, %3, %cst_82 {dimension_numbers = #tpu.dot_dimension_numbers<[1], [0], [0], [1], [0, 0, 1, 1], [], []>} : vector<2x32xbf16>, vector<32x128xbf16>, vector<2x128xf32> -> vector<2x128xf32>
    %336 = arith.addf %334, %335 : vector<2x128xf32>
    %337 = arith.negf %336 : vector<2x128xf32>
    %338 = math.exp %337 : vector<2x128xf32>
    %cst_83 = arith.constant 1.000000e+00 : f32
    %339 = vector.broadcast %cst_83 : f32 to vector<2x128xf32>
    %340 = arith.addf %339, %338 : vector<2x128xf32>
    %341 = arith.divf %339, %340 : vector<2x128xf32>
    %342 = math.tanh %336 : vector<2x128xf32>
    %343 = vector.extract_strided_slice %341 {offsets = [0, 0], sizes = [2, 32], strides = [1, 1]} : vector<2x128xf32> to vector<2x32xf32>
    %344 = vector.extract_strided_slice %341 {offsets = [0, 32], sizes = [2, 32], strides = [1, 1]} : vector<2x128xf32> to vector<2x32xf32>
    %345 = vector.extract_strided_slice %342 {offsets = [0, 64], sizes = [2, 32], strides = [1, 1]} : vector<2x128xf32> to vector<2x32xf32>
    %346 = vector.extract_strided_slice %341 {offsets = [0, 96], sizes = [2, 32], strides = [1, 1]} : vector<2x128xf32> to vector<2x32xf32>
    %347 = arith.mulf %344, %287 : vector<2x32xf32>
    %348 = arith.mulf %343, %345 : vector<2x32xf32>
    %349 = arith.addf %347, %348 : vector<2x32xf32>
    %350 = math.tanh %349 : vector<2x32xf32>
    %351 = arith.mulf %346, %350 : vector<2x32xf32>
    %352 = arith.truncf %351 : vector<2x32xf32> to vector<2x32xbf16>
    %353 = arith.truncf %310 : vector<2x32xf32> to vector<2x32xbf16>
    %cst_84 = arith.constant dense<0.000000e+00> : vector<2x128xf32>
    %354 = tpu.matmul %290, %1, %cst_84 {dimension_numbers = #tpu.dot_dimension_numbers<[1], [0], [0], [1], [0, 0, 1, 1], [], []>} : vector<2x32xbf16>, vector<32x128xbf16>, vector<2x128xf32> -> vector<2x128xf32>
    %cst_85 = arith.constant dense<0.000000e+00> : vector<2x128xf32>
    %355 = tpu.matmul %353, %4, %cst_85 {dimension_numbers = #tpu.dot_dimension_numbers<[1], [0], [0], [1], [0, 0, 1, 1], [], []>} : vector<2x32xbf16>, vector<32x128xbf16>, vector<2x128xf32> -> vector<2x128xf32>
    %356 = arith.addf %354, %355 : vector<2x128xf32>
    %357 = arith.addf %356, %8 : vector<2x128xf32>
    %358 = arith.negf %357 : vector<2x128xf32>
    %359 = math.exp %358 : vector<2x128xf32>
    %cst_86 = arith.constant 1.000000e+00 : f32
    %360 = vector.broadcast %cst_86 : f32 to vector<2x128xf32>
    %361 = arith.addf %360, %359 : vector<2x128xf32>
    %362 = arith.divf %360, %361 : vector<2x128xf32>
    %363 = math.tanh %357 : vector<2x128xf32>
    %364 = vector.extract_strided_slice %362 {offsets = [0, 0], sizes = [2, 32], strides = [1, 1]} : vector<2x128xf32> to vector<2x32xf32>
    %365 = vector.extract_strided_slice %362 {offsets = [0, 32], sizes = [2, 32], strides = [1, 1]} : vector<2x128xf32> to vector<2x32xf32>
    %366 = vector.extract_strided_slice %363 {offsets = [0, 64], sizes = [2, 32], strides = [1, 1]} : vector<2x128xf32> to vector<2x32xf32>
    %367 = vector.extract_strided_slice %362 {offsets = [0, 96], sizes = [2, 32], strides = [1, 1]} : vector<2x128xf32> to vector<2x32xf32>
    %368 = arith.mulf %365, %308 : vector<2x32xf32>
    %369 = arith.mulf %364, %366 : vector<2x32xf32>
    %370 = arith.addf %368, %369 : vector<2x32xf32>
    %371 = math.tanh %370 : vector<2x32xf32>
    %372 = arith.mulf %367, %371 : vector<2x32xf32>
    %373 = arith.truncf %372 : vector<2x32xf32> to vector<2x32xbf16>
    %374 = arith.truncf %331 : vector<2x32xf32> to vector<2x32xbf16>
    %cst_87 = arith.constant dense<0.000000e+00> : vector<2x128xf32>
    %375 = tpu.matmul %311, %2, %cst_87 {dimension_numbers = #tpu.dot_dimension_numbers<[1], [0], [0], [1], [0, 0, 1, 1], [], []>} : vector<2x32xbf16>, vector<32x128xbf16>, vector<2x128xf32> -> vector<2x128xf32>
    %cst_88 = arith.constant dense<0.000000e+00> : vector<2x128xf32>
    %376 = tpu.matmul %374, %5, %cst_88 {dimension_numbers = #tpu.dot_dimension_numbers<[1], [0], [0], [1], [0, 0, 1, 1], [], []>} : vector<2x32xbf16>, vector<32x128xbf16>, vector<2x128xf32> -> vector<2x128xf32>
    %377 = arith.addf %375, %376 : vector<2x128xf32>
    %378 = arith.addf %377, %11 : vector<2x128xf32>
    %379 = arith.negf %378 : vector<2x128xf32>
    %380 = math.exp %379 : vector<2x128xf32>
    %cst_89 = arith.constant 1.000000e+00 : f32
    %381 = vector.broadcast %cst_89 : f32 to vector<2x128xf32>
    %382 = arith.addf %381, %380 : vector<2x128xf32>
    %383 = arith.divf %381, %382 : vector<2x128xf32>
    %384 = math.tanh %378 : vector<2x128xf32>
    %385 = vector.extract_strided_slice %383 {offsets = [0, 0], sizes = [2, 32], strides = [1, 1]} : vector<2x128xf32> to vector<2x32xf32>
    %386 = vector.extract_strided_slice %383 {offsets = [0, 32], sizes = [2, 32], strides = [1, 1]} : vector<2x128xf32> to vector<2x32xf32>
    %387 = vector.extract_strided_slice %384 {offsets = [0, 64], sizes = [2, 32], strides = [1, 1]} : vector<2x128xf32> to vector<2x32xf32>
    %388 = vector.extract_strided_slice %383 {offsets = [0, 96], sizes = [2, 32], strides = [1, 1]} : vector<2x128xf32> to vector<2x32xf32>
    %389 = arith.mulf %386, %329 : vector<2x32xf32>
    %390 = arith.mulf %385, %387 : vector<2x32xf32>
    %391 = arith.addf %389, %390 : vector<2x32xf32>
    %392 = math.tanh %391 : vector<2x32xf32>
    %393 = arith.mulf %388, %392 : vector<2x32xf32>
    %c8_90 = arith.constant 8 : index
    %c0_91 = arith.constant 0 : index
    %394 = vector.load %arg16[%c8_90, %c0_91] : memref<16x32xf32, #tpu.memory_space<vmem>>, vector<2x32xf32>
    tpu.vector_store %arg16[%c8_90, %c0_91], %393 {strides = array<i32>} : memref<16x32xf32, #tpu.memory_space<vmem>>, vector<2x32xf32>,
    %395 = arith.truncf %351 : vector<2x32xf32> to vector<2x32xbf16>
    %c14 = arith.constant 14 : index
    %c0_92 = arith.constant 0 : index
    %396 = vector.load %arg15[%c14, %c0_92] : memref<16x128xf32, #tpu.memory_space<vmem>>, vector<2x128xf32>
    %cst_93 = arith.constant dense<0.000000e+00> : vector<2x128xf32>
    %397 = tpu.matmul %395, %3, %cst_93 {dimension_numbers = #tpu.dot_dimension_numbers<[1], [0], [0], [1], [0, 0, 1, 1], [], []>} : vector<2x32xbf16>, vector<32x128xbf16>, vector<2x128xf32> -> vector<2x128xf32>
    %398 = arith.addf %396, %397 : vector<2x128xf32>
    %399 = arith.negf %398 : vector<2x128xf32>
    %400 = math.exp %399 : vector<2x128xf32>
    %cst_94 = arith.constant 1.000000e+00 : f32
    %401 = vector.broadcast %cst_94 : f32 to vector<2x128xf32>
    %402 = arith.addf %401, %400 : vector<2x128xf32>
    %403 = arith.divf %401, %402 : vector<2x128xf32>
    %404 = math.tanh %398 : vector<2x128xf32>
    %405 = vector.extract_strided_slice %403 {offsets = [0, 0], sizes = [2, 32], strides = [1, 1]} : vector<2x128xf32> to vector<2x32xf32>
    %406 = vector.extract_strided_slice %403 {offsets = [0, 32], sizes = [2, 32], strides = [1, 1]} : vector<2x128xf32> to vector<2x32xf32>
    %407 = vector.extract_strided_slice %404 {offsets = [0, 64], sizes = [2, 32], strides = [1, 1]} : vector<2x128xf32> to vector<2x32xf32>
    %408 = vector.extract_strided_slice %403 {offsets = [0, 96], sizes = [2, 32], strides = [1, 1]} : vector<2x128xf32> to vector<2x32xf32>
    %409 = arith.mulf %406, %349 : vector<2x32xf32>
    %410 = arith.mulf %405, %407 : vector<2x32xf32>
    %411 = arith.addf %409, %410 : vector<2x32xf32>
    %412 = math.tanh %411 : vector<2x32xf32>
    %413 = arith.mulf %408, %412 : vector<2x32xf32>
    %414 = arith.truncf %413 : vector<2x32xf32> to vector<2x32xbf16>
    %415 = arith.truncf %372 : vector<2x32xf32> to vector<2x32xbf16>
    %cst_95 = arith.constant dense<0.000000e+00> : vector<2x128xf32>
    %416 = tpu.matmul %352, %1, %cst_95 {dimension_numbers = #tpu.dot_dimension_numbers<[1], [0], [0], [1], [0, 0, 1, 1], [], []>} : vector<2x32xbf16>, vector<32x128xbf16>, vector<2x128xf32> -> vector<2x128xf32>
    %cst_96 = arith.constant dense<0.000000e+00> : vector<2x128xf32>
    %417 = tpu.matmul %415, %4, %cst_96 {dimension_numbers = #tpu.dot_dimension_numbers<[1], [0], [0], [1], [0, 0, 1, 1], [], []>} : vector<2x32xbf16>, vector<32x128xbf16>, vector<2x128xf32> -> vector<2x128xf32>
    %418 = arith.addf %416, %417 : vector<2x128xf32>
    %419 = arith.addf %418, %8 : vector<2x128xf32>
    %420 = arith.negf %419 : vector<2x128xf32>
    %421 = math.exp %420 : vector<2x128xf32>
    %cst_97 = arith.constant 1.000000e+00 : f32
    %422 = vector.broadcast %cst_97 : f32 to vector<2x128xf32>
    %423 = arith.addf %422, %421 : vector<2x128xf32>
    %424 = arith.divf %422, %423 : vector<2x128xf32>
    %425 = math.tanh %419 : vector<2x128xf32>
    %426 = vector.extract_strided_slice %424 {offsets = [0, 0], sizes = [2, 32], strides = [1, 1]} : vector<2x128xf32> to vector<2x32xf32>
    %427 = vector.extract_strided_slice %424 {offsets = [0, 32], sizes = [2, 32], strides = [1, 1]} : vector<2x128xf32> to vector<2x32xf32>
    %428 = vector.extract_strided_slice %425 {offsets = [0, 64], sizes = [2, 32], strides = [1, 1]} : vector<2x128xf32> to vector<2x32xf32>
    %429 = vector.extract_strided_slice %424 {offsets = [0, 96], sizes = [2, 32], strides = [1, 1]} : vector<2x128xf32> to vector<2x32xf32>
    %430 = arith.mulf %427, %370 : vector<2x32xf32>
    %431 = arith.mulf %426, %428 : vector<2x32xf32>
    %432 = arith.addf %430, %431 : vector<2x32xf32>
    %433 = math.tanh %432 : vector<2x32xf32>
    %434 = arith.mulf %429, %433 : vector<2x32xf32>
    %435 = arith.truncf %434 : vector<2x32xf32> to vector<2x32xbf16>
    %436 = arith.truncf %393 : vector<2x32xf32> to vector<2x32xbf16>
    %cst_98 = arith.constant dense<0.000000e+00> : vector<2x128xf32>
    %437 = tpu.matmul %373, %2, %cst_98 {dimension_numbers = #tpu.dot_dimension_numbers<[1], [0], [0], [1], [0, 0, 1, 1], [], []>} : vector<2x32xbf16>, vector<32x128xbf16>, vector<2x128xf32> -> vector<2x128xf32>
    %cst_99 = arith.constant dense<0.000000e+00> : vector<2x128xf32>
    %438 = tpu.matmul %436, %5, %cst_99 {dimension_numbers = #tpu.dot_dimension_numbers<[1], [0], [0], [1], [0, 0, 1, 1], [], []>} : vector<2x32xbf16>, vector<32x128xbf16>, vector<2x128xf32> -> vector<2x128xf32>
    %439 = arith.addf %437, %438 : vector<2x128xf32>
    %440 = arith.addf %439, %11 : vector<2x128xf32>
    %441 = arith.negf %440 : vector<2x128xf32>
    %442 = math.exp %441 : vector<2x128xf32>
    %cst_100 = arith.constant 1.000000e+00 : f32
    %443 = vector.broadcast %cst_100 : f32 to vector<2x128xf32>
    %444 = arith.addf %443, %442 : vector<2x128xf32>
    %445 = arith.divf %443, %444 : vector<2x128xf32>
    %446 = math.tanh %440 : vector<2x128xf32>
    %447 = vector.extract_strided_slice %445 {offsets = [0, 0], sizes = [2, 32], strides = [1, 1]} : vector<2x128xf32> to vector<2x32xf32>
    %448 = vector.extract_strided_slice %445 {offsets = [0, 32], sizes = [2, 32], strides = [1, 1]} : vector<2x128xf32> to vector<2x32xf32>
    %449 = vector.extract_strided_slice %446 {offsets = [0, 64], sizes = [2, 32], strides = [1, 1]} : vector<2x128xf32> to vector<2x32xf32>
    %450 = vector.extract_strided_slice %445 {offsets = [0, 96], sizes = [2, 32], strides = [1, 1]} : vector<2x128xf32> to vector<2x32xf32>
    %451 = arith.mulf %448, %391 : vector<2x32xf32>
    %452 = arith.mulf %447, %449 : vector<2x32xf32>
    %453 = arith.addf %451, %452 : vector<2x32xf32>
    %454 = math.tanh %453 : vector<2x32xf32>
    %455 = arith.mulf %450, %454 : vector<2x32xf32>
    %c10_101 = arith.constant 10 : index
    %c0_102 = arith.constant 0 : index
    %456 = vector.load %arg16[%c10_101, %c0_102] : memref<16x32xf32, #tpu.memory_space<vmem>>, vector<2x32xf32>
    tpu.vector_store %arg16[%c10_101, %c0_102], %455 {strides = array<i32>} : memref<16x32xf32, #tpu.memory_space<vmem>>, vector<2x32xf32>,
    %457 = arith.truncf %434 : vector<2x32xf32> to vector<2x32xbf16>
    %cst_103 = arith.constant dense<0.000000e+00> : vector<2x128xf32>
    %458 = tpu.matmul %414, %1, %cst_103 {dimension_numbers = #tpu.dot_dimension_numbers<[1], [0], [0], [1], [0, 0, 1, 1], [], []>} : vector<2x32xbf16>, vector<32x128xbf16>, vector<2x128xf32> -> vector<2x128xf32>
    %cst_104 = arith.constant dense<0.000000e+00> : vector<2x128xf32>
    %459 = tpu.matmul %457, %4, %cst_104 {dimension_numbers = #tpu.dot_dimension_numbers<[1], [0], [0], [1], [0, 0, 1, 1], [], []>} : vector<2x32xbf16>, vector<32x128xbf16>, vector<2x128xf32> -> vector<2x128xf32>
    %460 = arith.addf %458, %459 : vector<2x128xf32>
    %461 = arith.addf %460, %8 : vector<2x128xf32>
    %462 = arith.negf %461 : vector<2x128xf32>
    %463 = math.exp %462 : vector<2x128xf32>
    %cst_105 = arith.constant 1.000000e+00 : f32
    %464 = vector.broadcast %cst_105 : f32 to vector<2x128xf32>
    %465 = arith.addf %464, %463 : vector<2x128xf32>
    %466 = arith.divf %464, %465 : vector<2x128xf32>
    %467 = math.tanh %461 : vector<2x128xf32>
    %468 = vector.extract_strided_slice %466 {offsets = [0, 0], sizes = [2, 32], strides = [1, 1]} : vector<2x128xf32> to vector<2x32xf32>
    %469 = vector.extract_strided_slice %466 {offsets = [0, 32], sizes = [2, 32], strides = [1, 1]} : vector<2x128xf32> to vector<2x32xf32>
    %470 = vector.extract_strided_slice %467 {offsets = [0, 64], sizes = [2, 32], strides = [1, 1]} : vector<2x128xf32> to vector<2x32xf32>
    %471 = vector.extract_strided_slice %466 {offsets = [0, 96], sizes = [2, 32], strides = [1, 1]} : vector<2x128xf32> to vector<2x32xf32>
    %472 = arith.mulf %469, %432 : vector<2x32xf32>
    %473 = arith.mulf %468, %470 : vector<2x32xf32>
    %474 = arith.addf %472, %473 : vector<2x32xf32>
    %475 = math.tanh %474 : vector<2x32xf32>
    %476 = arith.mulf %471, %475 : vector<2x32xf32>
    %477 = arith.truncf %476 : vector<2x32xf32> to vector<2x32xbf16>
    %478 = arith.truncf %455 : vector<2x32xf32> to vector<2x32xbf16>
    %cst_106 = arith.constant dense<0.000000e+00> : vector<2x128xf32>
    %479 = tpu.matmul %435, %2, %cst_106 {dimension_numbers = #tpu.dot_dimension_numbers<[1], [0], [0], [1], [0, 0, 1, 1], [], []>} : vector<2x32xbf16>, vector<32x128xbf16>, vector<2x128xf32> -> vector<2x128xf32>
    %cst_107 = arith.constant dense<0.000000e+00> : vector<2x128xf32>
    %480 = tpu.matmul %478, %5, %cst_107 {dimension_numbers = #tpu.dot_dimension_numbers<[1], [0], [0], [1], [0, 0, 1, 1], [], []>} : vector<2x32xbf16>, vector<32x128xbf16>, vector<2x128xf32> -> vector<2x128xf32>
    %481 = arith.addf %479, %480 : vector<2x128xf32>
    %482 = arith.addf %481, %11 : vector<2x128xf32>
    %483 = arith.negf %482 : vector<2x128xf32>
    %484 = math.exp %483 : vector<2x128xf32>
    %cst_108 = arith.constant 1.000000e+00 : f32
    %485 = vector.broadcast %cst_108 : f32 to vector<2x128xf32>
    %486 = arith.addf %485, %484 : vector<2x128xf32>
    %487 = arith.divf %485, %486 : vector<2x128xf32>
    %488 = math.tanh %482 : vector<2x128xf32>
    %489 = vector.extract_strided_slice %487 {offsets = [0, 0], sizes = [2, 32], strides = [1, 1]} : vector<2x128xf32> to vector<2x32xf32>
    %490 = vector.extract_strided_slice %487 {offsets = [0, 32], sizes = [2, 32], strides = [1, 1]} : vector<2x128xf32> to vector<2x32xf32>
    %491 = vector.extract_strided_slice %488 {offsets = [0, 64], sizes = [2, 32], strides = [1, 1]} : vector<2x128xf32> to vector<2x32xf32>
    %492 = vector.extract_strided_slice %487 {offsets = [0, 96], sizes = [2, 32], strides = [1, 1]} : vector<2x128xf32> to vector<2x32xf32>
    %493 = arith.mulf %490, %453 : vector<2x32xf32>
    %494 = arith.mulf %489, %491 : vector<2x32xf32>
    %495 = arith.addf %493, %494 : vector<2x32xf32>
    %496 = math.tanh %495 : vector<2x32xf32>
    %497 = arith.mulf %492, %496 : vector<2x32xf32>
    %c12_109 = arith.constant 12 : index
    %c0_110 = arith.constant 0 : index
    %498 = vector.load %arg16[%c12_109, %c0_110] : memref<16x32xf32, #tpu.memory_space<vmem>>, vector<2x32xf32>
    tpu.vector_store %arg16[%c12_109, %c0_110], %497 {strides = array<i32>} : memref<16x32xf32, #tpu.memory_space<vmem>>, vector<2x32xf32>,
    %499 = arith.truncf %497 : vector<2x32xf32> to vector<2x32xbf16>
    %cst_111 = arith.constant dense<0.000000e+00> : vector<2x128xf32>
    %500 = tpu.matmul %477, %2, %cst_111 {dimension_numbers = #tpu.dot_dimension_numbers<[1], [0], [0], [1], [0, 0, 1, 1], [], []>} : vector<2x32xbf16>, vector<32x128xbf16>, vector<2x128xf32> -> vector<2x128xf32>
    %cst_112 = arith.constant dense<0.000000e+00> : vector<2x128xf32>
    %501 = tpu.matmul %499, %5, %cst_112 {dimension_numbers = #tpu.dot_dimension_numbers<[1], [0], [0], [1], [0, 0, 1, 1], [], []>} : vector<2x32xbf16>, vector<32x128xbf16>, vector<2x128xf32> -> vector<2x128xf32>
    %502 = arith.addf %500, %501 : vector<2x128xf32>
    %503 = arith.addf %502, %11 : vector<2x128xf32>
    %504 = arith.negf %503 : vector<2x128xf32>
    %505 = math.exp %504 : vector<2x128xf32>
    %cst_113 = arith.constant 1.000000e+00 : f32
    %506 = vector.broadcast %cst_113 : f32 to vector<2x128xf32>
    %507 = arith.addf %506, %505 : vector<2x128xf32>
    %508 = arith.divf %506, %507 : vector<2x128xf32>
    %509 = math.tanh %503 : vector<2x128xf32>
    %510 = vector.extract_strided_slice %508 {offsets = [0, 0], sizes = [2, 32], strides = [1, 1]} : vector<2x128xf32> to vector<2x32xf32>
    %511 = vector.extract_strided_slice %508 {offsets = [0, 32], sizes = [2, 32], strides = [1, 1]} : vector<2x128xf32> to vector<2x32xf32>
    %512 = vector.extract_strided_slice %509 {offsets = [0, 64], sizes = [2, 32], strides = [1, 1]} : vector<2x128xf32> to vector<2x32xf32>
    %513 = vector.extract_strided_slice %508 {offsets = [0, 96], sizes = [2, 32], strides = [1, 1]} : vector<2x128xf32> to vector<2x32xf32>
    %514 = arith.mulf %511, %495 : vector<2x32xf32>
    %515 = arith.mulf %510, %512 : vector<2x32xf32>
    %516 = arith.addf %514, %515 : vector<2x32xf32>
    %517 = math.tanh %516 : vector<2x32xf32>
    %518 = arith.mulf %513, %517 : vector<2x32xf32>
    %c14_114 = arith.constant 14 : index
    %c0_115 = arith.constant 0 : index
    %519 = vector.load %arg16[%c14_114, %c0_115] : memref<16x32xf32, #tpu.memory_space<vmem>>, vector<2x32xf32>
    tpu.vector_store %arg16[%c14_114, %c0_115], %518 {strides = array<i32>} : memref<16x32xf32, #tpu.memory_space<vmem>>, vector<2x32xf32>,
    %c0_116 = arith.constant 0 : index
    %c0_117 = arith.constant 0 : index
    %520 = vector.load %arg16[%c0_116, %c0_117] : memref<16x32xf32, #tpu.memory_space<vmem>>, vector<16x32xf32>
    %521 = arith.truncf %520 : vector<16x32xf32> to vector<16x32xbf16>
    %c0_118 = arith.constant 0 : index
    %c0_119 = arith.constant 0 : index
    %522 = vector.load %arg10[%c0_118, %c0_119] : memref<32x32xbf16, #tpu.memory_space<vmem>>, vector<32x32xbf16>
    %cst_120 = arith.constant dense<0.000000e+00> : vector<16x32xf32>
    %523 = tpu.matmul %521, %522, %cst_120 {dimension_numbers = #tpu.dot_dimension_numbers<[1], [0], [0], [1], [0, 0, 1, 1], [], []>} : vector<16x32xbf16>, vector<32x32xbf16>, vector<16x32xf32> -> vector<16x32xf32>
    %c0_121 = arith.constant 0 : index
    %c0_122 = arith.constant 0 : index
    %524 = vector.load %arg11[%c0_121, %c0_122] : memref<1x32xf32, #tpu.memory_space<vmem>>, vector<1x32xf32>
    %525 = vector.broadcast %524 : vector<1x32xf32> to vector<16x32xf32>
    %526 = arith.addf %523, %525 : vector<16x32xf32>
    %cst_123 = arith.constant 0.000000e+00 : f32
    %527 = vector.broadcast %cst_123 : f32 to vector<16x32xf32>
    %528 = arith.maximumf %526, %527 : vector<16x32xf32>
    %529 = arith.truncf %528 : vector<16x32xf32> to vector<16x32xbf16>
    %c0_124 = arith.constant 0 : index
    %c0_125 = arith.constant 0 : index
    %530 = vector.load %arg12[%c0_124, %c0_125] : memref<32x32xbf16, #tpu.memory_space<vmem>>, vector<32x32xbf16>
    %cst_126 = arith.constant dense<0.000000e+00> : vector<16x32xf32>
    %531 = tpu.matmul %529, %530, %cst_126 {dimension_numbers = #tpu.dot_dimension_numbers<[1], [0], [0], [1], [0, 0, 1, 1], [], []>} : vector<16x32xbf16>, vector<32x32xbf16>, vector<16x32xf32> -> vector<16x32xf32>
    %c0_127 = arith.constant 0 : index
    %c0_128 = arith.constant 0 : index
    %532 = vector.load %arg13[%c0_127, %c0_128] : memref<1x32xf32, #tpu.memory_space<vmem>>, vector<1x32xf32>
    %533 = vector.broadcast %532 : vector<1x32xf32> to vector<16x32xf32>
    %534 = arith.addf %531, %533 : vector<16x32xf32>
    %535 = arith.negf %534 : vector<16x32xf32>
    %536 = math.exp %535 : vector<16x32xf32>
    %cst_129 = arith.constant 1.000000e+00 : f32
    %537 = vector.broadcast %cst_129 : f32 to vector<16x32xf32>
    %538 = arith.addf %537, %536 : vector<16x32xf32>
    %539 = arith.divf %537, %538 : vector<16x32xf32>
    %c0_130 = arith.constant 0 : index
    %c0_131 = arith.constant 0 : index
    %540 = vector.load %arg14[%c0_130, %c0_131] : memref<16x32xf32, #tpu.memory_space<vmem>>, vector<16x32xf32>
    tpu.vector_store %arg14[%c0_130, %c0_131], %539 {strides = array<i32>} : memref<16x32xf32, #tpu.memory_space<vmem>>, vector<16x32xf32>,
    return
  }
}

</mosaic_0001>

<bundles_post_ra>
// kernel: lstm_embedder_forward.1
= control target key start
LH: loop header
LB: loop body
LE: loop exit
PB: predicated region body
PF: predicated region fallthrough
CT: control target
= control target key end

     0   :  { %vm101_vm0 = vcmask 1041408   ;;  %v3568_v0 = vmov 0.0   ;;  %vm3569_vm1 = vmmov 0   ;;  %vm97_vm2 = vcmask 31744   ;;  %s3571_s21 = smov 64   ;;  %s4333_s1 = inlined_call_operand.vmem [shape: bf16[4,128], index: 1, kind: input, shape index: {}]   ;;  %s4334_s0 = inlined_call_operand.vmem [shape: bf16[16,4], index: 0, kind: input, shape index: {}]   ;;  %s4335_s2 = inlined_call_operand.vmem [shape: bf16[32,128], index: 2, kind: input, shape index: {}]   ;;  %s4336_s3 = inlined_call_operand.vmem [shape: f32[1,128], index: 3, kind: input, shape index: {}]   ;;  %s4337_s5 = inlined_call_operand.vmem [shape: bf16[32,128], index: 5, kind: input, shape index: {}]   ;;  %s4338_s4 = inlined_call_operand.vmem [shape: bf16[32,128], index: 4, kind: input, shape index: {}]   ;;  %s4339_s6 = inlined_call_operand.vmem [shape: f32[1,128], index: 6, kind: input, shape index: {}]   ;;  %s4340_s7 = inlined_call_operand.vmem [shape: bf16[32,128], index: 7, kind: input, shape index: {}]   ;;  %s4341_s8 = inlined_call_operand.vmem [shape: bf16[32,128], index: 8, kind: input, shape index: {}]   ;;  %s4342_s9 = inlined_call_operand.vmem [shape: f32[1,128], index: 9, kind: input, shape index: {}]   ;;  %s4343_s10 = inlined_call_operand.vmem [shape: bf16[32,32], index: 10, kind: input, shape index: {}]   ;;  %s4344_s12 = inlined_call_operand.vmem [shape: bf16[32,32], index: 12, kind: input, shape index: {}]   ;;  %s4345_s11 = inlined_call_operand.vmem [shape: f32[1,32], index: 11, kind: input, shape index: {}]   ;;  %s4346_s13 = inlined_call_operand.vmem [shape: f32[1,32], index: 13, kind: input, shape index: {}]   ;;  %s4347_s14 = inlined_call_operand.vmem [shape: f32[16,32], index: 14, kind: output, shape index: {}]  }
   0x1   :  { %2994 = vmatprep.subr.bf16.mxu0 %v3568_v0  ;;  %v48_v1 = vld [vmem:[%s4333_s1] sm:$0x3]  ;;  %2996 = vmatprep.mubr.msk.bf16.mxu0 %vm3569_vm1, %v3568_v0  ;;  %v3670_v5 = vld [vmem:[%s4335_s2 + $0x8] sm:$0xff]   ;;  %v3570_v6 = vmov 0   ;;  %vm161_vm3 = vcmask 261120   ;;  %vm752_vm4 = vcmask 254976  }
   0x2   :  { %v103_v2 = vsel %vm101_vm0, %v48_v1, 0  ;;  %3000 = vmatprep.subr.bf16.mxu1 %v3568_v0  ;;  %v3341_v3 = vld [vmem:[%s4334_s0] sm:$0xff]   ;;  %3004 = vmatprep.mubr.msk.bf16.mxu1 %vm3569_vm1, %v3568_v0  ;;  %v3703_v32 = vld [vmem:[%s4337_s5 + $0x8] sm:$0xff]  }
   0x3   :  { %2995 = vmatpush3.bf16.msra.mxu0 %v103_v2  ;;  %v3663_v4 = vld [vmem:[%s4335_s2] sm:$0xff]   ;;  %v3725_v38 = vld [vmem:[%s4338_s4 + $0x8] sm:$0xff]  }
   0x4   :  { %3008 = vmatprep.subr.bf16.mxu0 %v3568_v0  ;;  %3001 = vmatpush3.bf16.msra.mxu1 %v3663_v4  ;;  %v2782_v7 = vld [vmem:[%s4336_s3] ss:$0 sm:$0xff]  ;;  %s3572_s3 = smov 32  }
   0x5   :  { %3002 = vmatprep.subr.bf16.mxu1 %v3568_v0  ;;  %v3695_v30 = vld [vmem:[%s4337_s5] sm:$0xff]  }
   0x6   :  { %2997 = vmatmul.mubr.msk.bf16.vlgmr.msra.gmra.mrb[0].mxu0 %vm97_vm2, %v3341_v3  ;;  %v3718_v36 = vld [vmem:[%s4338_s4] sm:$0xff]  }
   0x7   :  { %3009 = vmatpush3.bf16.msra.mxu0 %v3663_v4  ;;  %3012 = vmatprep.mubr.msk.bf16.mxu0 %vm3569_vm1, %v3568_v0  ;;  %v3742_v49 = vld [vmem:[%s4339_s6] ss:$0 sm:$0xff] }
   0x8   :  { %3010 = vmatprep.subr.bf16.mxu0 %v3568_v0  ;;  %3003 = vmatpush3.bf16.msra.mxu1 %v3670_v5 }
   0x9   :  { %3016 = vmatprep.subr.bf16.mxu1 %v3568_v0 }
   0xb   :  { %3011 = vmatpush3.bf16.msra.mxu0 %v3670_v5  ;;  %3005 = vmatmul.mubr.bf16.vlgmr.msra.gmra.mrb[0].mxu1 %v3570_v6 }
   0xc   :  { %3024 = vmatprep.subr.bf16.mxu0 %v3568_v0  ;;  %3020 = vmatprep.mubr.msk.bf16.mxu1 %vm3569_vm1, %v3568_v0 }
   0xd   :  { %3017 = vmatpush3.bf16.msra.mxu1 %v3695_v30 }
   0xe   :  { %3018 = vmatprep.subr.bf16.mxu1 %v3568_v0 }
  0x11   :  { %3019 = vmatpush3.bf16.msra.mxu1 %v3703_v32 }
  0x12   :  { %3032 = vmatprep.subr.bf16.mxu1 %v3568_v0 }
  0x14   :  { %3021 = vmatmul.mubr.bf16.vlgmr.msra.gmra.mrb[4].mxu1 %v3570_v6 }
  0x15   :  { %3033 = vmatpush3.bf16.msra.mxu1 %v3663_v4  ;;  %3036 = vmatprep.mubr.msk.bf16.mxu1 %vm3569_vm1, %v3568_v0 }
  0x16   :  { %3034 = vmatprep.subr.bf16.mxu1 %v3568_v0 }
  0x19   :  { %3035 = vmatpush3.bf16.msra.mxu1 %v3670_v5 }
  0x1a   :  { %3048 = vmatprep.subr.bf16.mxu1 %v3568_v0 }
  0xd9   :  { %v139_v8 = vpop.f32.mrb[0].mxu0 }
  0xda   :  { %v140_v9 = vadd.f32 %v2782_v7, %v139_v8  ;;  %v2998_v10 = vpop.f32.mrb[1].mxu0 }
  0xdb   :  { %v142_v11 = vpop.f32.mrb[2].mxu0 }
  0xdc   :  { %146 = vst [vmem:[#allocation2] sm:$0xff] %v140_v9  ;;  %v143_v12 = vadd.f32 %v2782_v7, %v142_v11  ;;  %v2999_v13 = vpop.f32.mrb[3].mxu0 }
  0xde   :  { %147 = vst [vmem:[#allocation2 + $0x8] sm:$0xff] %v143_v12  ;;  %v199_v14 = vpop.f32.mrb[0].mxu1 }
  0xdf   :  { %v3006_v15 = vpop.f32.mrb[1].mxu1 }
  0xe0   :  { %v202_v16 = vpop.f32.mrb[2].mxu1 }
  0xe1   :  { %v3007_v17 = vpop.f32.mrb[3].mxu1 }
  0xe3   :  { %v148_v18 = vld [vmem:[#allocation2] sm:$0x3]  ;;  %v231_v43 = vld [vmem:[#allocation2 + $0x2] sm:$0x3] }
  0xe4   :  { %v205_v19 = vadd.f32 %v199_v14, %v148_v18 }
  0xe6   :  { %3356 = vtanh.f32 %v205_v19  ;;  %v2787_v21 = vmul.f32 -1.442695, %v205_v19 }
  0xe7   :  { %v350_v39 = vpop.f32.mrb[4].mxu1 }
  0xe8   :  { %3358 = vpow2.f32 %v2787_v21  ;;  %v3022_v40 = vpop.f32.mrb[5].mxu1 }
  0xe9   :  { %v353_v41 = vpop.f32.mrb[6].mxu1 }
  0xea   :  { %v3023_v42 = vpop.f32.mrb[7].mxu1 }
  0xf0   :  { %v3357_v20 = vpop.eup %3356 }
  0xf1   :  { %215 = vrot.lane.b32.xlu0 %v3357_v20, %s3571_s21 }
  0xf2   :  { %v3359_v22 = vpop.eup %3358 }
  0xf3   :  { %v209_v23 = vadd.f32 1.0, %v3359_v22 }
  0xf5   :  { %3360 = vrcp.f32 %v209_v23 }
  0xff   :  { %v3361_v24 = vpop.eup %3360 }
 0x100   :  { %v213_v27 = vmul.f32 0.0, %v3361_v24 }
 0x163   :  { %v216_v25 = vpop.permute.xlu0 %215 }
 0x164   :  { %v218_v26 = vmul.f32 %v3361_v24, %v216_v25  ;;  %v3769_v25 = vld [vmem:[%s4340_s7] sm:$0xff]  }
 0x166   :  { %220 = vrot.lane.b32.xlu0 %v218_v26, %s3572_s3  ;;  %v3775_v26 = vld [vmem:[%s4341_s8] sm:$0xff]  }
 0x1d8   :  { %v221_v28 = vpop.permute.xlu0 %220 }
 0x1d9   :  { %v3689_v29 = vadd.f32 %v221_v28, %v213_v27  ;;  %v3782_v28 = vld [vmem:[%s4340_s7 + $0x8] sm:$0xff]  }
 0x1db   :  { %3362 = vtanh.f32 %v3689_v29 }
 0x1e5   :  { %v3363_v31 = vpop.eup %3362 }
 0x1e6   :  { %226 = vrot.lane.b32.xlu1 %v3363_v31, %s3571_s21  ;;  %v434_v31 = vld [vmem:[#allocation2 + $0x4] sm:$0x3] }
 0x258   :  { %v227_v33 = vpop.permute.xlu1 %226 }
 0x259   :  { %v229_v34 = vmul.f32 %v3361_v24, %v227_v33 }
 0x25b   :  { %v230_v35 = vpack.c.bf16 %v229_v34, %v229_v34 }
 0x25d   :  { %233 = vrot.lane.b32.xlu1 %v230_v35, %s3572_s3 }
 0x2cf   :  { %v234_v37 = vpop.permute.xlu1 %233 }
 0x2d0   :  { %3013 = vmatmul.mubr.msk.bf16.vlgmr.msra.gmra.mrb[4].mxu0 %vm161_vm3, %v234_v37 }
 0x2d1   :  { %3025 = vmatpush3.bf16.msra.mxu0 %v3718_v36  ;;  %3028 = vmatprep.mubr.msk.bf16.mxu0 %vm3569_vm1, %v3568_v0 }
 0x2d2   :  { %3026 = vmatprep.subr.bf16.mxu0 %v3568_v0 }
 0x2d5   :  { %3027 = vmatpush3.bf16.msra.mxu0 %v3725_v38 }
 0x2d6   :  { %3040 = vmatprep.subr.bf16.mxu0 %v3568_v0 }
 0x2d8   :  { %3029 = vmatmul.mubr.msk.bf16.vlgmr.msra.gmra.mrb[8].mxu0 %vm161_vm3, %v234_v37 }
 0x2d9   :  { %3041 = vmatpush3.bf16.msra.mxu0 %v3695_v30  ;;  %3044 = vmatprep.mubr.msk.bf16.mxu0 %vm3569_vm1, %v3568_v0 }
 0x2da   :  { %3042 = vmatprep.subr.bf16.mxu0 %v3568_v0 }
 0x2dd   :  { %3043 = vmatpush3.bf16.msra.mxu0 %v3703_v32 }
 0x2de   :  { %3056 = vmatprep.subr.bf16.mxu0 %v3568_v0 }
 0x3a3   :  { %v272_v44 = vpop.f32.mrb[4].mxu0 }
 0x3a4   :  { %v278_v45 = vadd.f32 %v272_v44, %v231_v43  ;;  %v3014_v46 = vpop.f32.mrb[5].mxu0 }
 0x3a5   :  { %v275_v47 = vpop.f32.mrb[6].mxu0 }
 0x3a6   :  { %3364 = vtanh.f32 %v278_v45  ;;  %v3015_v48 = vpop.f32.mrb[7].mxu0  ;;  %v2789_v58 = vmul.f32 -1.442695, %v278_v45 }
 0x3ab   :  { %v402_v50 = vpop.f32.mrb[8].mxu0 }
 0x3ac   :  { %v403_v51 = vadd.f32 %v402_v50, %v350_v39  ;;  %v3030_v52 = vpop.f32.mrb[9].mxu0 }
 0x3ad   :  { %v405_v53 = vpop.f32.mrb[10].mxu0 }
 0x3ae   :  { %v408_v54 = vadd.f32 %v3742_v49, %v403_v51  ;;  %v3031_v55 = vpop.f32.mrb[11].mxu0  ;;  %v3820_v53 = vld [vmem:[%s4342_s9] ss:$0 sm:$0xff] }
 0x3b0   :  { %v3365_v56 = vpop.eup %3364  ;;  %3366 = vtanh.f32 %v408_v54  ;;  %v2795_v59 = vmul.f32 -1.442695, %v408_v54 }
 0x3b1   :  { %288 = vrot.lane.b32.xlu0 %v3365_v56, %s3571_s21  ;;  %3368 = vpow2.f32 %v2789_v58 }
 0x3b2   :  { %3370 = vpow2.f32 %v2795_v59 }
 0x3ba   :  { %v3367_v57 = vpop.eup %3366 }
 0x3bb   :  { %418 = vrot.lane.b32.xlu1 %v3367_v57, %s3571_s21  ;;  %v3369_v60 = vpop.eup %3368 }
 0x3bc   :  { %v282_v61 = vadd.f32 1.0, %v3369_v60  ;;  %v3371_v62 = vpop.eup %3370 }
 0x3bd   :  { %v412_v63 = vadd.f32 1.0, %v3371_v62 }
 0x3be   :  { %3372 = vrcp.f32 %v282_v61 }
 0x3bf   :  { %3374 = vrcp.f32 %v412_v63 }
 0x3c8   :  { %v3373_v1 = vpop.eup %3372 }
 0x3c9   :  { %v3375_v7 = vpop.eup %3374  ;;  %v286_v10 = vmul.f32 %v3373_v1, %v3689_v29  ;;  %v3792_v29 = vld [vmem:[%s4341_s8 + $0x8] sm:$0xff]  }
 0x3ca   :  { %v416_v13 = vmul.f32 0.0, %v3375_v7 }
 0x423   :  { %v289_v2 = vpop.permute.xlu0 %288 }
 0x424   :  { %v291_v3 = vmul.f32 %v3373_v1, %v289_v2 }
 0x426   :  { %293 = vrot.lane.b32.xlu0 %v291_v3, %s3572_s3 }
 0x42d   :  { %v419_v8 = vpop.permute.xlu1 %418 }
 0x42e   :  { %v421_v9 = vmul.f32 %v3375_v7, %v419_v8 }
 0x430   :  { %423 = vrot.lane.b32.xlu1 %v421_v9, %s3572_s3 }
 0x498   :  { %v294_v11 = vpop.permute.xlu0 %293 }
 0x499   :  { %v3750_v12 = vadd.f32 %v294_v11, %v286_v10 }
 0x49b   :  { %3376 = vtanh.f32 %v3750_v12 }
 0x4a2   :  { %v424_v14 = vpop.permute.xlu1 %423 }
 0x4a3   :  { %v3753_v15 = vadd.f32 %v424_v14, %v416_v13 }
 0x4a5   :  { %v3377_v16 = vpop.eup %3376  ;;  %3378 = vtanh.f32 %v3753_v15 }
 0x4a6   :  { %299 = vrot.lane.b32.xlu0 %v3377_v16, %s3571_s21 }
 0x4af   :  { %v3379_v17 = vpop.eup %3378 }
 0x4b0   :  { %429 = vrot.lane.b32.xlu1 %v3379_v17, %s3571_s21 }
 0x518   :  { %v300_v18 = vpop.permute.xlu0 %299 }
 0x519   :  { %v302_v19 = vmul.f32 %v3373_v1, %v300_v18 }
 0x51b   :  { %v303_v20 = vpack.c.bf16 %v302_v19, %v302_v19 }
 0x51d   :  { %436 = vrot.lane.b32.xlu0 %v303_v20, %s3572_s3 }
 0x522   :  { %v430_v21 = vpop.permute.xlu1 %429 }
 0x523   :  { %v432_v22 = vmul.f32 %v3375_v7, %v430_v21 }
 0x525   :  { %v433_v23 = vpack.c.bf16 %v432_v22, %v432_v22 }
 0x527   :  { %508 = vrot.lane.b32.xlu1 %v433_v23, %s3572_s3 }
 0x58f   :  { %v437_v24 = vpop.permute.xlu0 %436 }
 0x590   :  { %3037 = vmatmul.mubr.msk.bf16.vlgmr.msra.gmra.mrb[8].mxu1 %vm161_vm3, %v437_v24 }
 0x591   :  { %3049 = vmatpush3.bf16.msra.mxu1 %v3718_v36  ;;  %3052 = vmatprep.mubr.msk.bf16.mxu1 %vm3569_vm1, %v3568_v0 }
 0x592   :  { %3050 = vmatprep.subr.bf16.mxu1 %v3568_v0 }
 0x595   :  { %3051 = vmatpush3.bf16.msra.mxu1 %v3725_v38 }
 0x596   :  { %3064 = vmatprep.subr.bf16.mxu1 %v3568_v0 }
 0x598   :  { %3053 = vmatmul.mubr.msk.bf16.vlgmr.msra.gmra.mrb[12].mxu1 %vm161_vm3, %v437_v24 }
 0x599   :  { %3065 = vmatpush3.bf16.msra.mxu1 %v3769_v25  ;;  %v509_v27 = vpop.permute.xlu1 %508  ;;  %3068 = vmatprep.mubr.msk.bf16.mxu1 %vm3569_vm1, %v3568_v0 }
 0x59a   :  { %3045 = vmatmul.mubr.msk.bf16.vlgmr.msra.gmra.mrb[12].mxu0 %vm161_vm3, %v509_v27  ;;  %3066 = vmatprep.subr.bf16.mxu1 %v3568_v0 }
 0x59b   :  { %3057 = vmatpush3.bf16.msra.mxu0 %v3775_v26  ;;  %3060 = vmatprep.mubr.msk.bf16.mxu0 %vm3569_vm1, %v3568_v0 }
 0x59c   :  { %3058 = vmatprep.subr.bf16.mxu0 %v3568_v0 }
 0x59d   :  { %3067 = vmatpush3.bf16.msra.mxu1 %v3782_v28 }
 0x59e   :  { %3080 = vmatprep.subr.bf16.mxu1 %v3568_v0 }
 0x59f   :  { %3059 = vmatpush3.bf16.msra.mxu0 %v3792_v29 }
 0x5a0   :  { %3069 = vmatmul.mubr.msk.bf16.vlgmr.msra.gmra.mrb[16].mxu1 %vm161_vm3, %v509_v27  ;;  %3072 = vmatprep.subr.bf16.mxu0 %v3568_v0 }
 0x5a1   :  { %3081 = vmatpush3.bf16.msra.mxu1 %v3695_v30  ;;  %3084 = vmatprep.mubr.msk.bf16.mxu1 %vm3569_vm1, %v3568_v0 }
 0x5a2   :  { %3061 = vmatmul.mubr.bf16.vlgmr.msra.gmra.mrb[16].mxu0 %v3570_v6  ;;  %3082 = vmatprep.subr.bf16.mxu1 %v3568_v0 }
 0x5a3   :  { %3073 = vmatpush3.bf16.msra.mxu0 %v3663_v4  ;;  %3076 = vmatprep.mubr.msk.bf16.mxu0 %vm3569_vm1, %v3568_v0 }
 0x5a4   :  { %3074 = vmatprep.subr.bf16.mxu0 %v3568_v0 }
 0x5a5   :  { %3083 = vmatpush3.bf16.msra.mxu1 %v3703_v32 }
 0x5a6   :  { %3096 = vmatprep.subr.bf16.mxu1 %v3568_v0 }
 0x5a7   :  { %3075 = vmatpush3.bf16.msra.mxu0 %v3670_v5 }
 0x5a8   :  { %3088 = vmatprep.subr.bf16.mxu0 %v3568_v0 }
 0x663   :  { %v475_v33 = vpop.f32.mrb[8].mxu1 }
 0x664   :  { %v481_v6 = vadd.f32 %v475_v33, %v434_v31  ;;  %v3038_v34 = vpop.f32.mrb[9].mxu1 }
 0x665   :  { %v478_v35 = vpop.f32.mrb[10].mxu1 }
 0x666   :  { %3380 = vtanh.f32 %v481_v6  ;;  %v3039_v37 = vpop.f32.mrb[11].mxu1  ;;  %v2797_v1 = vmul.f32 -1.442695, %v481_v6 }
 0x66b   :  { %v587_v39 = vpop.f32.mrb[12].mxu1 }
 0x66c   :  { %v3054_v40 = vpop.f32.mrb[13].mxu1 }
 0x66d   :  { %v547_v41 = vpop.f32.mrb[12].mxu0  ;;  %v590_v42 = vpop.f32.mrb[14].mxu1 }
 0x66e   :  { %v588_v43 = vadd.f32 %v587_v39, %v547_v41  ;;  %v3046_v44 = vpop.f32.mrb[13].mxu0  ;;  %v3055_v45 = vpop.f32.mrb[15].mxu1 }
 0x66f   :  { %v550_v46 = vpop.f32.mrb[14].mxu0 }
 0x670   :  { %v3381_v47 = vpop.eup %3380  ;;  %v593_v48 = vadd.f32 %v3742_v49, %v588_v43  ;;  %v3047_v50 = vpop.f32.mrb[15].mxu0 }
 0x671   :  { %491 = vrot.lane.b32.xlu0 %v3381_v47, %s3571_s21 }
 0x672   :  { %3382 = vtanh.f32 %v593_v48  ;;  %v2800_v2 = vmul.f32 -1.442695, %v593_v48 }
 0x673   :  { %v717_v51 = vpop.f32.mrb[16].mxu1 }
 0x674   :  { %v3070_v52 = vpop.f32.mrb[17].mxu1 }
 0x675   :  { %v665_v54 = vpop.f32.mrb[16].mxu0  ;;  %v720_v55 = vpop.f32.mrb[18].mxu1 }
 0x676   :  { %v718_v56 = vadd.f32 %v717_v51, %v665_v54  ;;  %v3062_v57 = vpop.f32.mrb[17].mxu0  ;;  %v3071_v58 = vpop.f32.mrb[19].mxu1  ;;  %v754_v55 = vld [vmem:[#allocation2 + $0x6] sm:$0x3] }
 0x677   :  { %v668_v59 = vpop.f32.mrb[18].mxu0 }
 0x678   :  { %v723_v60 = vadd.f32 %v3820_v53, %v718_v56  ;;  %v3063_v61 = vpop.f32.mrb[19].mxu0 }
 0x67a   :  { %3384 = vtanh.f32 %v723_v60  ;;  %v2806_v8 = vmul.f32 -1.442695, %v723_v60 }
 0x67b   :  { %3386 = vpow2.f32 %v2797_v1 }
 0x67c   :  { %v3383_v62 = vpop.eup %3382  ;;  %3388 = vpow2.f32 %v2800_v2 }
 0x67d   :  { %603 = vrot.lane.b32.xlu1 %v3383_v62, %s3571_s21 }
 0x684   :  { %v3385_v63 = vpop.eup %3384 }
 0x685   :  { %733 = vrot.lane.b32.xlu0 %v3385_v63, %s3571_s21  ;;  %v3387_v3 = vpop.eup %3386 }
 0x686   :  { %v485_v7 = vadd.f32 1.0, %v3387_v3  ;;  %v3389_v9 = vpop.eup %3388 }
 0x687   :  { %v597_v10 = vadd.f32 1.0, %v3389_v9 }
 0x688   :  { %3390 = vrcp.f32 %v485_v7 }
 0x689   :  { %3392 = vpow2.f32 %v2806_v8 }
 0x68a   :  { %3394 = vrcp.f32 %v597_v10 }
 0x692   :  { %v3391_v11 = vpop.eup %3390 }
 0x693   :  { %v3393_v16 = vpop.eup %3392  ;;  %v489_v24 = vmul.f32 %v3391_v11, %v3750_v12 }
 0x694   :  { %v727_v17 = vadd.f32 1.0, %v3393_v16  ;;  %v3395_v18 = vpop.eup %3394 }
 0x695   :  { %v601_v33 = vmul.f32 %v3395_v18, %v3753_v15 }
 0x696   :  { %3396 = vrcp.f32 %v727_v17 }
 0x6a0   :  { %v3397_v21 = vpop.eup %3396 }
 0x6a1   :  { %v731_v37 = vmul.f32 0.0, %v3397_v21 }
 0x6e3   :  { %v492_v13 = vpop.permute.xlu0 %491 }
 0x6e4   :  { %v494_v14 = vmul.f32 %v3391_v11, %v492_v13 }
 0x6e6   :  { %496 = vrot.lane.b32.xlu1 %v494_v14, %s3572_s3 }
 0x6ef   :  { %v604_v19 = vpop.permute.xlu1 %603 }
 0x6f0   :  { %v606_v20 = vmul.f32 %v3395_v18, %v604_v19 }
 0x6f2   :  { %608 = vrot.lane.b32.xlu0 %v606_v20, %s3572_s3 }
 0x6f7   :  { %v734_v22 = vpop.permute.xlu0 %733 }
 0x6f8   :  { %v736_v23 = vmul.f32 %v3397_v21, %v734_v22 }
 0x6fa   :  { %738 = vrot.lane.b32.xlu1 %v736_v23, %s3572_s3 }
 0x758   :  { %v497_v27 = vpop.permute.xlu1 %496 }
 0x759   :  { %v3829_v31 = vadd.f32 %v497_v27, %v489_v24 }
 0x75b   :  { %3398 = vtanh.f32 %v3829_v31 }
 0x764   :  { %v609_v6 = vpop.permute.xlu0 %608 }
 0x765   :  { %v3399_v34 = vpop.eup %3398  ;;  %v3833_v35 = vadd.f32 %v609_v6, %v601_v33 }
 0x766   :  { %502 = vrot.lane.b32.xlu0 %v3399_v34, %s3571_s21 }
 0x767   :  { %3400 = vtanh.f32 %v3833_v35 }
 0x76c   :  { %v739_v39 = vpop.permute.xlu1 %738 }
 0x76d   :  { %v3837_v40 = vadd.f32 %v739_v39, %v731_v37 }
 0x76f   :  { %3402 = vtanh.f32 %v3837_v40 }
 0x771   :  { %v3401_v12 = vpop.eup %3400 }
 0x772   :  { %614 = vrot.lane.b32.xlu1 %v3401_v12, %s3571_s21 }
 0x779   :  { %v3403_v41 = vpop.eup %3402 }
 0x77a   :  { %744 = vrot.lane.b32.xlu0 %v3403_v41, %s3571_s21 }
 0x7d8   :  { %v503_v15 = vpop.permute.xlu0 %502 }
 0x7d9   :  { %v505_v42 = vmul.f32 %v3391_v11, %v503_v15 }
 0x7db   :  { %v506_v43 = vpack.c.bf16 %v505_v42, %v505_v42 }
 0x7dd   :  { %756 = vrot.lane.b32.xlu1 %v506_v43, %s3572_s3 }
 0x7e4   :  { %v615_v44 = vpop.permute.xlu1 %614 }
 0x7e5   :  { %v617_v45 = vmul.f32 %v3395_v18, %v615_v44 }
 0x7e7   :  { %v618_v46 = vpack.c.bf16 %v617_v45, %v617_v45 }
 0x7e9   :  { %828 = vrot.lane.b32.xlu0 %v618_v46, %s3572_s3 }
 0x7ec   :  { %v745_v47 = vpop.permute.xlu0 %744 }
 0x7ed   :  { %v3844_v48 = vmul.f32 %v3397_v21, %v745_v47 }
 0x7ef   :  { %v939_v50 = vpack.c.bf16 %v3844_v48, %v3844_v48 }
 0x7f1   :  { %941 = vrot.lane.b32.xlu1 %v939_v50, %s3572_s3 }
 0x84f   :  { %v757_v51 = vpop.permute.xlu1 %756 }
 0x850   :  { %3077 = vmatmul.mubr.msk.bf16.vlgmr.msra.gmra.mrb[20].mxu0 %vm161_vm3, %v757_v51 }
 0x851   :  { %3089 = vmatpush3.bf16.msra.mxu0 %v3718_v36  ;;  %3092 = vmatprep.mubr.msk.bf16.mxu0 %vm3569_vm1, %v3568_v0 }
 0x852   :  { %3090 = vmatprep.subr.bf16.mxu0 %v3568_v0 }
 0x855   :  { %3091 = vmatpush3.bf16.msra.mxu0 %v3725_v38 }
 0x856   :  { %3104 = vmatprep.subr.bf16.mxu0 %v3568_v0 }
 0x858   :  { %3093 = vmatmul.mubr.msk.bf16.vlgmr.msra.gmra.mrb[24].mxu0 %vm161_vm3, %v757_v51 }
 0x859   :  { %3105 = vmatpush3.bf16.msra.mxu0 %v3769_v25  ;;  %3108 = vmatprep.mubr.msk.bf16.mxu0 %vm3569_vm1, %v3568_v0 }
 0x85a   :  { %3106 = vmatprep.subr.bf16.mxu0 %v3568_v0 }
 0x85b   :  { %v829_v52 = vpop.permute.xlu0 %828 }
 0x85c   :  { %3085 = vmatmul.mubr.msk.bf16.vlgmr.msra.gmra.mrb[20].mxu1 %vm161_vm3, %v829_v52 }
 0x85d   :  { %3097 = vmatpush3.bf16.msra.mxu1 %v3775_v26  ;;  %3107 = vmatpush3.bf16.msra.mxu0 %v3782_v28 }
 0x85e   :  { %3098 = vmatprep.subr.bf16.mxu1 %v3568_v0  ;;  %3100 = vmatprep.mubr.msk.bf16.mxu1 %vm3569_vm1, %v3568_v0 }
 0x85f   :  { %3120 = vmatprep.subr.bf16.mxu0 %v3568_v0 }
 0x860   :  { %3109 = vmatmul.mubr.msk.bf16.vlgmr.msra.gmra.mrb[28].mxu0 %vm161_vm3, %v829_v52 }
 0x861   :  { %3099 = vmatpush3.bf16.msra.mxu1 %v3792_v29  ;;  %3121 = vmatpush3.bf16.msra.mxu0 %v3695_v30 }
 0x862   :  { %3112 = vmatprep.subr.bf16.mxu1 %v3568_v0  ;;  %3122 = vmatprep.subr.bf16.mxu0 %v3568_v0 }
 0x863   :  { %v942_v54 = vpop.permute.xlu1 %941  ;;  %3124 = vmatprep.mubr.msk.bf16.mxu0 %vm3569_vm1, %v3568_v0 }
 0x864   :  { %3101 = vmatmul.mubr.msk.bf16.vlgmr.msra.gmra.mrb[24].mxu1 %vm161_vm3, %v942_v54 }
 0x865   :  { %3113 = vmatpush3.bf16.msra.mxu1 %v3663_v4  ;;  %3116 = vmatprep.mubr.msk.bf16.mxu1 %vm3569_vm1, %v3568_v0 }
 0x866   :  { %3114 = vmatprep.subr.bf16.mxu1 %v3568_v0  ;;  %3123 = vmatpush3.bf16.msra.mxu0 %v3703_v32 }
 0x867   :  { %3136 = vmatprep.subr.bf16.mxu0 %v3568_v0 }
 0x869   :  { %3115 = vmatpush3.bf16.msra.mxu1 %v3670_v5 }
 0x86a   :  { %3128 = vmatprep.subr.bf16.mxu1 %v3568_v0 }
 0x923   :  { %v795_v56 = vpop.f32.mrb[20].mxu0 }
 0x924   :  { %v801_v57 = vadd.f32 %v795_v56, %v754_v55  ;;  %v3078_v58 = vpop.f32.mrb[21].mxu0 }
 0x925   :  { %v798_v59 = vpop.f32.mrb[22].mxu0 }
 0x926   :  { %3404 = vtanh.f32 %v801_v57  ;;  %v3079_v60 = vpop.f32.mrb[23].mxu0  ;;  %v2808_v33 = vmul.f32 -1.442695, %v801_v57 }
 0x92b   :  { %v907_v61 = vpop.f32.mrb[24].mxu0 }
 0x92c   :  { %v3094_v62 = vpop.f32.mrb[25].mxu0 }
 0x92d   :  { %v910_v63 = vpop.f32.mrb[26].mxu0 }
 0x92e   :  { %v3095_v1 = vpop.f32.mrb[27].mxu0 }
 0x92f   :  { %v867_v2 = vpop.f32.mrb[20].mxu1 }
 0x930   :  { %v3405_v3 = vpop.eup %3404  ;;  %v908_v7 = vadd.f32 %v907_v61, %v867_v2  ;;  %v3086_v8 = vpop.f32.mrb[21].mxu1 }
 0x931   :  { %v870_v9 = vpop.f32.mrb[22].mxu1  ;;  %811 = vrot.lane.b32.xlu0 %v3405_v3, %s3571_s21 }
 0x932   :  { %v913_v10 = vadd.f32 %v3742_v49, %v908_v7  ;;  %v3087_v11 = vpop.f32.mrb[23].mxu1 }
 0x933   :  { %v1020_v13 = vpop.f32.mrb[28].mxu0 }
 0x934   :  { %3406 = vtanh.f32 %v913_v10  ;;  %v3110_v14 = vpop.f32.mrb[29].mxu0  ;;  %v2811_v34 = vmul.f32 -1.442695, %v913_v10 }
 0x935   :  { %v1023_v16 = vpop.f32.mrb[30].mxu0 }
 0x936   :  { %v3111_v17 = vpop.f32.mrb[31].mxu0 }
 0x937   :  { %v980_v18 = vpop.f32.mrb[24].mxu1 }
 0x938   :  { %v1021_v19 = vadd.f32 %v1020_v13, %v980_v18  ;;  %v3102_v20 = vpop.f32.mrb[25].mxu1 }
 0x939   :  { %v983_v21 = vpop.f32.mrb[26].mxu1 }
 0x93a   :  { %v1026_v22 = vadd.f32 %v3820_v53, %v1021_v19  ;;  %v3103_v23 = vpop.f32.mrb[27].mxu1 }
 0x93c   :  { %3408 = vtanh.f32 %v1026_v22  ;;  %v2814_v39 = vmul.f32 -1.442695, %v1026_v22 }
 0x93d   :  { %3410 = vpow2.f32 %v2808_v33 }
 0x93e   :  { %v3407_v24 = vpop.eup %3406  ;;  %3412 = vpow2.f32 %v2811_v34 }
 0x93f   :  { %923 = vrot.lane.b32.xlu1 %v3407_v24, %s3571_s21 }
 0x946   :  { %v3409_v27 = vpop.eup %3408 }
 0x947   :  { %1036 = vrot.lane.b32.xlu0 %v3409_v27, %s3571_s21  ;;  %v3411_v6 = vpop.eup %3410 }
 0x948   :  { %v805_v37 = vadd.f32 1.0, %v3411_v6  ;;  %v3413_v12 = vpop.eup %3412 }
 0x949   :  { %v917_v15 = vadd.f32 1.0, %v3413_v12 }
 0x94a   :  { %3414 = vrcp.f32 %v805_v37 }
 0x94b   :  { %3416 = vpow2.f32 %v2814_v39 }
 0x94c   :  { %3418 = vrcp.f32 %v917_v15 }
 0x954   :  { %v3415_v41 = vpop.eup %3414 }
 0x955   :  { %v3417_v44 = vpop.eup %3416  ;;  %v809_v55 = vmul.f32 %v3415_v41, %v3829_v31 }
 0x956   :  { %v1030_v45 = vadd.f32 1.0, %v3417_v44  ;;  %v3419_v46 = vpop.eup %3418 }
 0x957   :  { %v921_v59 = vmul.f32 %v3419_v46, %v3833_v35 }
 0x958   :  { %3420 = vrcp.f32 %v1030_v45 }
 0x962   :  { %v3421_v51 = vpop.eup %3420 }
 0x963   :  { %v1034_v62 = vmul.f32 %v3421_v51, %v3837_v40 }
 0x9a3   :  { %v812_v42 = vpop.permute.xlu0 %811 }
 0x9a4   :  { %v814_v43 = vmul.f32 %v3415_v41, %v812_v42 }
 0x9a6   :  { %816 = vrot.lane.b32.xlu1 %v814_v43, %s3572_s3 }
 0x9b1   :  { %v924_v47 = vpop.permute.xlu1 %923 }
 0x9b2   :  { %v926_v50 = vmul.f32 %v3419_v46, %v924_v47 }
 0x9b4   :  { %928 = vrot.lane.b32.xlu0 %v926_v50, %s3572_s3 }
 0x9b9   :  { %v1037_v52 = vpop.permute.xlu0 %1036 }
 0x9ba   :  { %v1039_v54 = vmul.f32 %v3421_v51, %v1037_v52 }
 0x9bc   :  { %1041 = vrot.lane.b32.xlu1 %v1039_v54, %s3572_s3 }
 0xa18   :  { %v817_v56 = vpop.permute.xlu1 %816 }
 0xa19   :  { %v3893_v57 = vadd.f32 %v817_v56, %v809_v55 }
 0xa1b   :  { %3422 = vtanh.f32 %v3893_v57 }
 0xa25   :  { %v3423_v58 = vpop.eup %3422 }
 0xa26   :  { %822 = vrot.lane.b32.xlu0 %v3423_v58, %s3571_s21  ;;  %v929_v60 = vpop.permute.xlu0 %928 }
 0xa27   :  { %v3898_v61 = vadd.f32 %v929_v60, %v921_v59 }
 0xa29   :  { %3424 = vtanh.f32 %v3898_v61 }
 0xa2e   :  { %v1042_v63 = vpop.permute.xlu1 %1041 }
 0xa2f   :  { %v3902_v1 = vadd.f32 %v1042_v63, %v1034_v62 }
 0xa31   :  { %3426 = vtanh.f32 %v3902_v1 }
 0xa33   :  { %v3425_v31 = vpop.eup %3424 }
 0xa34   :  { %934 = vrot.lane.b32.xlu1 %v3425_v31, %s3571_s21 }
 0xa3b   :  { %v3427_v2 = vpop.eup %3426 }
 0xa3c   :  { %1047 = vrot.lane.b32.xlu0 %v3427_v2, %s3571_s21 }
 0xa98   :  { %v823_v35 = vpop.permute.xlu0 %822 }
 0xa99   :  { %v825_v3 = vmul.f32 %v3415_v41, %v823_v35 }
 0xa9b   :  { %v826_v7 = vpack.c.bf16 %v825_v3, %v825_v3 }
 0xa9d   :  { %1058 = vrot.lane.b32.xlu1 %v826_v7, %s3572_s3 }
 0xaa6   :  { %v935_v8 = vpop.permute.xlu1 %934 }
 0xaa7   :  { %v937_v9 = vmul.f32 %v3419_v46, %v935_v8 }
 0xaa9   :  { %v938_v10 = vpack.c.bf16 %v937_v9, %v937_v9 }
 0xaab   :  { %1130 = vrot.lane.b32.xlu0 %v938_v10, %s3572_s3 }
 0xaae   :  { %v1048_v40 = vpop.permute.xlu0 %1047 }
 0xaaf   :  { %v3909_v11 = vmul.f32 %v3421_v51, %v1048_v40 }
 0xab1   :  { %v1241_v13 = vpack.c.bf16 %v3909_v11, %v3909_v11 }
 0xab3   :  { %1243 = vrot.lane.b32.xlu1 %v1241_v13, %s3572_s3 }
 0xb0f   :  { %v1059_v14 = vpop.permute.xlu1 %1058 }
 0xb10   :  { %3117 = vmatmul.mubr.msk.bf16.vlgmr.msra.gmra.mrb[28].mxu1 %vm161_vm3, %v1059_v14 }
 0xb11   :  { %3129 = vmatpush3.bf16.msra.mxu1 %v3718_v36  ;;  %3132 = vmatprep.mubr.msk.bf16.mxu1 %vm3569_vm1, %v3568_v0 }
 0xb12   :  { %3130 = vmatprep.subr.bf16.mxu1 %v3568_v0 }
 0xb15   :  { %3131 = vmatpush3.bf16.msra.mxu1 %v3725_v38 }
 0xb16   :  { %3144 = vmatprep.subr.bf16.mxu1 %v3568_v0 }
 0xb18   :  { %3133 = vmatmul.mubr.msk.bf16.vlgmr.msra.gmra.mrb[32].mxu1 %vm161_vm3, %v1059_v14 }
 0xb19   :  { %3145 = vmatpush3.bf16.msra.mxu1 %v3769_v25  ;;  %3148 = vmatprep.mubr.msk.bf16.mxu1 %vm3569_vm1, %v3568_v0 }
 0xb1a   :  { %3146 = vmatprep.subr.bf16.mxu1 %v3568_v0 }
 0xb1d   :  { %3147 = vmatpush3.bf16.msra.mxu1 %v3782_v28  ;;  %v1131_v16 = vpop.permute.xlu0 %1130 }
 0xb1e   :  { %3125 = vmatmul.mubr.msk.bf16.vlgmr.msra.gmra.mrb[32].mxu0 %vm161_vm3, %v1131_v16  ;;  %3160 = vmatprep.subr.bf16.mxu1 %v3568_v0 }
 0xb1f   :  { %3137 = vmatpush3.bf16.msra.mxu0 %v3775_v26  ;;  %3140 = vmatprep.mubr.msk.bf16.mxu0 %vm3569_vm1, %v3568_v0 }
 0xb20   :  { %3149 = vmatmul.mubr.msk.bf16.vlgmr.msra.gmra.mrb[36].mxu1 %vm161_vm3, %v1131_v16  ;;  %3138 = vmatprep.subr.bf16.mxu0 %v3568_v0 }
 0xb21   :  { %3161 = vmatpush3.bf16.msra.mxu1 %v3695_v30  ;;  %3164 = vmatprep.mubr.msk.bf16.mxu1 %vm3569_vm1, %v3568_v0  ;;  %v1056_v30 = vld [vmem:[#allocation2 + $0x8] sm:$0x3] }
 0xb22   :  { %3162 = vmatprep.subr.bf16.mxu1 %v3568_v0 }
 0xb23   :  { %3139 = vmatpush3.bf16.msra.mxu0 %v3792_v29 }
 0xb24   :  { %3152 = vmatprep.subr.bf16.mxu0 %v3568_v0 }
 0xb25   :  { %v1244_v17 = vpop.permute.xlu1 %1243  ;;  %3163 = vmatpush3.bf16.msra.mxu1 %v3703_v32 }
 0xb26   :  { %3141 = vmatmul.mubr.msk.bf16.vlgmr.msra.gmra.mrb[36].mxu0 %vm161_vm3, %v1244_v17  ;;  %3176 = vmatprep.subr.bf16.mxu1 %v3568_v0 }
 0xb27   :  { %3153 = vmatpush3.bf16.msra.mxu0 %v3663_v4  ;;  %3156 = vmatprep.mubr.msk.bf16.mxu0 %vm3569_vm1, %v3568_v0 }
 0xb28   :  { %3154 = vmatprep.subr.bf16.mxu0 %v3568_v0 }
 0xb2b   :  { %3155 = vmatpush3.bf16.msra.mxu0 %v3670_v5 }
 0xb2c   :  { %3168 = vmatprep.subr.bf16.mxu0 %v3568_v0 }
 0xbe3   :  { %v1097_v18 = vpop.f32.mrb[28].mxu1 }
 0xbe4   :  { %v1103_v19 = vadd.f32 %v1097_v18, %v1056_v30  ;;  %v3118_v20 = vpop.f32.mrb[29].mxu1 }
 0xbe5   :  { %v1100_v21 = vpop.f32.mrb[30].mxu1 }
 0xbe6   :  { %3428 = vtanh.f32 %v1103_v19  ;;  %v3119_v22 = vpop.f32.mrb[31].mxu1  ;;  %v2816_v55 = vmul.f32 -1.442695, %v1103_v19 }
 0xbeb   :  { %v1209_v23 = vpop.f32.mrb[32].mxu1 }
 0xbec   :  { %v3134_v24 = vpop.f32.mrb[33].mxu1 }
 0xbed   :  { %v1212_v27 = vpop.f32.mrb[34].mxu1 }
 0xbee   :  { %v3135_v4 = vpop.f32.mrb[35].mxu1 }
 0xbf0   :  { %v3429_v33 = vpop.eup %3428 }
 0xbf1   :  { %1113 = vrot.lane.b32.xlu0 %v3429_v33, %s3571_s21  ;;  %v1169_v6 = vpop.f32.mrb[32].mxu0 }
 0xbf2   :  { %v1210_v34 = vadd.f32 %v1209_v23, %v1169_v6  ;;  %v3126_v37 = vpop.f32.mrb[33].mxu0 }
 0xbf3   :  { %v1172_v5 = vpop.f32.mrb[34].mxu0  ;;  %v1322_v39 = vpop.f32.mrb[36].mxu1 }
 0xbf4   :  { %v1215_v12 = vadd.f32 %v3742_v49, %v1210_v34  ;;  %v3127_v41 = vpop.f32.mrb[35].mxu0  ;;  %v3150_v15 = vpop.f32.mrb[37].mxu1 }
 0xbf5   :  { %v1325_v42 = vpop.f32.mrb[38].mxu1  ;;  %v4016_v41 = vld [vmem:[%s4335_s2] sm:$0xff]   ;;  %v1358_v15 = vld [vmem:[#allocation2 + $0xa] sm:$0x3] }
 0xbf6   :  { %3430 = vtanh.f32 %v1215_v12  ;;  %v3151_v43 = vpop.f32.mrb[39].mxu1  ;;  %v2819_v58 = vmul.f32 -1.442695, %v1215_v12 }
 0xbf9   :  { %v1282_v44 = vpop.f32.mrb[36].mxu0 }
 0xbfa   :  { %v1323_v45 = vadd.f32 %v1322_v39, %v1282_v44  ;;  %v3142_v46 = vpop.f32.mrb[37].mxu0 }
 0xbfb   :  { %v1285_v47 = vpop.f32.mrb[38].mxu0 }
 0xbfc   :  { %v1328_v50 = vadd.f32 %v3820_v53, %v1323_v45  ;;  %v3143_v51 = vpop.f32.mrb[39].mxu0 }
 0xbfe   :  { %3432 = vtanh.f32 %v1328_v50  ;;  %v2822_v60 = vmul.f32 -1.442695, %v1328_v50 }
 0xbff   :  { %3434 = vpow2.f32 %v2816_v55 }
 0xc00   :  { %v3431_v52 = vpop.eup %3430  ;;  %3436 = vpow2.f32 %v2819_v58 }
 0xc01   :  { %1225 = vrot.lane.b32.xlu1 %v3431_v52, %s3571_s21 }
 0xc08   :  { %v3433_v54 = vpop.eup %3432 }
 0xc09   :  { %1338 = vrot.lane.b32.xlu0 %v3433_v54, %s3571_s21  ;;  %v3435_v56 = vpop.eup %3434 }
 0xc0a   :  { %v1107_v59 = vadd.f32 1.0, %v3435_v56  ;;  %v3437_v62 = vpop.eup %3436 }
 0xc0b   :  { %v1219_v35 = vadd.f32 1.0, %v3437_v62 }
 0xc0c   :  { %3438 = vrcp.f32 %v1107_v59 }
 0xc0d   :  { %3440 = vpow2.f32 %v2822_v60 }
 0xc0e   :  { %3442 = vrcp.f32 %v1219_v35 }
 0xc16   :  { %v3439_v63 = vpop.eup %3438 }
 0xc17   :  { %v3441_v3 = vpop.eup %3440  ;;  %v1111_v16 = vmul.f32 %v3439_v63, %v3893_v57 }
 0xc18   :  { %v1332_v7 = vadd.f32 1.0, %v3441_v3  ;;  %v3443_v8 = vpop.eup %3442 }
 0xc19   :  { %v1223_v19 = vmul.f32 %v3443_v8, %v3898_v61 }
 0xc1a   :  { %3444 = vrcp.f32 %v1332_v7 }
 0xc24   :  { %v3445_v40 = vpop.eup %3444 }
 0xc25   :  { %v1336_v22 = vmul.f32 %v3445_v40, %v3902_v1 }
 0xc63   :  { %v1114_v31 = vpop.permute.xlu0 %1113 }
 0xc64   :  { %v1116_v2 = vmul.f32 %v3439_v63, %v1114_v31 }
 0xc66   :  { %1118 = vrot.lane.b32.xlu1 %v1116_v2, %s3572_s3 }
 0xc73   :  { %v1226_v9 = vpop.permute.xlu1 %1225 }
 0xc74   :  { %v1228_v10 = vmul.f32 %v3443_v8, %v1226_v9 }
 0xc76   :  { %1230 = vrot.lane.b32.xlu0 %v1228_v10, %s3572_s3 }
 0xc7b   :  { %v1339_v13 = vpop.permute.xlu0 %1338 }
 0xc7c   :  { %v1341_v14 = vmul.f32 %v3445_v40, %v1339_v13 }
 0xc7e   :  { %1343 = vrot.lane.b32.xlu1 %v1341_v14, %s3572_s3 }
 0xcd8   :  { %v1119_v17 = vpop.permute.xlu1 %1118 }
 0xcd9   :  { %v3958_v30 = vadd.f32 %v1119_v17, %v1111_v16 }
 0xcdb   :  { %3446 = vtanh.f32 %v3958_v30 }
 0xce5   :  { %v3447_v18 = vpop.eup %3446 }
 0xce6   :  { %1124 = vrot.lane.b32.xlu0 %v3447_v18, %s3571_s21 }
 0xce8   :  { %v1231_v20 = vpop.permute.xlu0 %1230 }
 0xce9   :  { %v3963_v21 = vadd.f32 %v1231_v20, %v1223_v19 }
 0xceb   :  { %3448 = vtanh.f32 %v3963_v21 }
 0xcf0   :  { %v1344_v23 = vpop.permute.xlu1 %1343 }
 0xcf1   :  { %v3967_v24 = vadd.f32 %v1344_v23, %v1336_v22 }
 0xcf3   :  { %3450 = vtanh.f32 %v3967_v24 }
 0xcf5   :  { %v3449_v57 = vpop.eup %3448 }
 0xcf6   :  { %1236 = vrot.lane.b32.xlu1 %v3449_v57, %s3571_s21 }
 0xcfd   :  { %v3451_v27 = vpop.eup %3450 }
 0xcfe   :  { %1349 = vrot.lane.b32.xlu0 %v3451_v27, %s3571_s21 }
 0xd58   :  { %v1125_v4 = vpop.permute.xlu0 %1124 }
 0xd59   :  { %v1127_v61 = vmul.f32 %v3439_v63, %v1125_v4 }
 0xd5b   :  { %v1128_v33 = vpack.c.bf16 %v1127_v61, %v1127_v61 }
 0xd5d   :  { %1360 = vrot.lane.b32.xlu1 %v1128_v33, %s3572_s3 }
 0xd68   :  { %v1237_v6 = vpop.permute.xlu1 %1236 }
 0xd69   :  { %v1239_v34 = vmul.f32 %v3443_v8, %v1237_v6 }
 0xd6b   :  { %v1240_v37 = vpack.c.bf16 %v1239_v34, %v1239_v34 }
 0xd6d   :  { %1432 = vrot.lane.b32.xlu0 %v1240_v37, %s3572_s3 }
 0xd70   :  { %v1350_v1 = vpop.permute.xlu0 %1349 }
 0xd71   :  { %v3974_v5 = vmul.f32 %v3445_v40, %v1350_v1 }
 0xd73   :  { %v1543_v39 = vpack.c.bf16 %v3974_v5, %v3974_v5 }
 0xd75   :  { %1545 = vrot.lane.b32.xlu1 %v1543_v39, %s3572_s3 }
 0xdcf   :  { %v1361_v12 = vpop.permute.xlu1 %1360 }
 0xdd0   :  { %3157 = vmatmul.mubr.msk.bf16.vlgmr.msra.gmra.mrb[40].mxu0 %vm161_vm3, %v1361_v12 }
 0xdd1   :  { %3169 = vmatpush3.bf16.msra.mxu0 %v3718_v36  ;;  %3172 = vmatprep.mubr.msk.bf16.mxu0 %vm3569_vm1, %v3568_v0 }
 0xdd2   :  { %3170 = vmatprep.subr.bf16.mxu0 %v3568_v0 }
 0xdd5   :  { %3171 = vmatpush3.bf16.msra.mxu0 %v3725_v38  ;;  %v4002_v38 = vld [vmem:[%s4337_s5] sm:$0xff]  }
 0xdd6   :  { %3184 = vmatprep.subr.bf16.mxu0 %v3568_v0 }
 0xdd8   :  { %3173 = vmatmul.mubr.msk.bf16.vlgmr.msra.gmra.mrb[44].mxu0 %vm161_vm3, %v1361_v12 }
 0xdd9   :  { %3185 = vmatpush3.bf16.msra.mxu0 %v3769_v25  ;;  %3188 = vmatprep.mubr.msk.bf16.mxu0 %vm3569_vm1, %v3568_v0 }
 0xdda   :  { %3186 = vmatprep.subr.bf16.mxu0 %v3568_v0 }
 0xddd   :  { %3187 = vmatpush3.bf16.msra.mxu0 %v3782_v28 }
 0xdde   :  { %3200 = vmatprep.subr.bf16.mxu0 %v3568_v0 }
 0xddf   :  { %v1433_v36 = vpop.permute.xlu0 %1432 }
 0xde0   :  { %3165 = vmatmul.mubr.msk.bf16.vlgmr.msra.gmra.mrb[40].mxu1 %vm161_vm3, %v1433_v36  ;;  %3189 = vmatmul.mubr.msk.bf16.vlgmr.msra.gmra.mrb[48].mxu0 %vm161_vm3, %v1433_v36 }
 0xde1   :  { %3177 = vmatpush3.bf16.msra.mxu1 %v3775_v26  ;;  %3180 = vmatprep.mubr.msk.bf16.mxu1 %vm3569_vm1, %v3568_v0 }
 0xde2   :  { %3178 = vmatprep.subr.bf16.mxu1 %v3568_v0  ;;  %3201 = vmatpush3.bf16.msra.mxu0 %v4002_v38 }
 0xde3   :  { %3202 = vmatprep.subr.bf16.mxu0 %v3568_v0  ;;  %3204 = vmatprep.mubr.msk.bf16.mxu0 %vm3569_vm1, %v3568_v0 }
 0xde5   :  { %3179 = vmatpush3.bf16.msra.mxu1 %v3792_v29 }
 0xde6   :  { %3192 = vmatprep.subr.bf16.mxu1 %v3568_v0  ;;  %3203 = vmatpush3.bf16.msra.mxu0 %v3703_v32  ;;  %v4025_v32 = vld [vmem:[%s4335_s2 + $0x8] sm:$0xff]  }
 0xde7   :  { %v1546_v26 = vpop.permute.xlu1 %1545  ;;  %3216 = vmatprep.subr.bf16.mxu0 %v3568_v0 }
 0xde8   :  { %3181 = vmatmul.mubr.msk.bf16.vlgmr.msra.gmra.mrb[44].mxu1 %vm161_vm3, %v1546_v26 }
 0xde9   :  { %3193 = vmatpush3.bf16.msra.mxu1 %v4016_v41  ;;  %3196 = vmatprep.mubr.msk.bf16.mxu1 %vm3569_vm1, %v3568_v0 }
 0xdea   :  { %3194 = vmatprep.subr.bf16.mxu1 %v3568_v0 }
 0xded   :  { %3195 = vmatpush3.bf16.msra.mxu1 %v4025_v32 }
 0xdee   :  { %3208 = vmatprep.subr.bf16.mxu1 %v3568_v0 }
 0xea3   :  { %v1399_v42 = vpop.f32.mrb[40].mxu0 }
 0xea4   :  { %v1405_v43 = vadd.f32 %v1399_v42, %v1358_v15  ;;  %v3158_v44 = vpop.f32.mrb[41].mxu0 }
 0xea5   :  { %v1402_v45 = vpop.f32.mrb[42].mxu0 }
 0xea6   :  { %3452 = vtanh.f32 %v1405_v43  ;;  %v3159_v46 = vpop.f32.mrb[43].mxu0  ;;  %v2824_v16 = vmul.f32 -1.442695, %v1405_v43 }
 0xeab   :  { %v1511_v47 = vpop.f32.mrb[44].mxu0 }
 0xeac   :  { %v3174_v50 = vpop.f32.mrb[45].mxu0 }
 0xead   :  { %v1514_v51 = vpop.f32.mrb[46].mxu0 }
 0xeae   :  { %v3175_v52 = vpop.f32.mrb[47].mxu0 }
 0xeb0   :  { %v3453_v54 = vpop.eup %3452 }
 0xeb1   :  { %1415 = vrot.lane.b32.xlu0 %v3453_v54, %s3571_s21 }
 0xeb3   :  { %v1471_v55 = vpop.f32.mrb[40].mxu1  ;;  %v1624_v56 = vpop.f32.mrb[48].mxu0 }
 0xeb4   :  { %v1512_v58 = vadd.f32 %v1511_v47, %v1471_v55  ;;  %v3166_v59 = vpop.f32.mrb[41].mxu1  ;;  %v3190_v60 = vpop.f32.mrb[49].mxu0 }
 0xeb5   :  { %v1474_v62 = vpop.f32.mrb[42].mxu1  ;;  %v1627_v63 = vpop.f32.mrb[50].mxu0 }
 0xeb6   :  { %v1517_v31 = vadd.f32 %v3742_v49, %v1512_v58  ;;  %v3167_v2 = vpop.f32.mrb[43].mxu1  ;;  %v3191_v35 = vpop.f32.mrb[51].mxu0  ;;  %v4063_v62 = vld [vmem:[%s4338_s4] sm:$0xff]   ;;  %v4072_v63 = vld [vmem:[%s4338_s4 + $0x8] sm:$0xff]  }
 0xeb7   :  { %v4088_v2 = vld [vmem:[%s4341_s8] sm:$0xff]  }
 0xeb8   :  { %3454 = vtanh.f32 %v1517_v31  ;;  %v2827_v18 = vmul.f32 -1.442695, %v1517_v31 }
 0xebb   :  { %v1584_v3 = vpop.f32.mrb[44].mxu1 }
 0xebc   :  { %v1625_v7 = vadd.f32 %v1624_v56, %v1584_v3  ;;  %v3182_v8 = vpop.f32.mrb[45].mxu1 }
 0xebd   :  { %v1587_v9 = vpop.f32.mrb[46].mxu1 }
 0xebe   :  { %v1630_v10 = vadd.f32 %v3820_v53, %v1625_v7  ;;  %v3183_v40 = vpop.f32.mrb[47].mxu1 }
 0xec0   :  { %3456 = vtanh.f32 %v1630_v10  ;;  %v2830_v19 = vmul.f32 -1.442695, %v1630_v10 }
 0xec1   :  { %3458 = vpow2.f32 %v2824_v16 }
 0xec2   :  { %v3455_v13 = vpop.eup %3454 }
 0xec3   :  { %1527 = vrot.lane.b32.xlu1 %v3455_v13, %s3571_s21 }
 0xeca   :  { %v3457_v14 = vpop.eup %3456 }
 0xecb   :  { %1640 = vrot.lane.b32.xlu0 %v3457_v14, %s3571_s21  ;;  %v3459_v49 = vpop.eup %3458 }
 0xecc   :  { %v1409_v17 = vadd.f32 1.0, %v3459_v49 }
 0xece   :  { %3460 = vrcp.f32 %v1409_v17 }
 0xecf   :  { %3462 = vpow2.f32 %v2827_v18 }
 0xed0   :  { %3464 = vpow2.f32 %v2830_v19 }
 0xed8   :  { %v3461_v20 = vpop.eup %3460 }
 0xed9   :  { %v3463_v23 = vpop.eup %3462  ;;  %v1413_v12 = vmul.f32 %v3461_v20, %v3958_v30 }
 0xeda   :  { %v1521_v27 = vadd.f32 1.0, %v3463_v23  ;;  %v3465_v4 = vpop.eup %3464 }
 0xedb   :  { %v1634_v61 = vadd.f32 1.0, %v3465_v4 }
 0xedc   :  { %3466 = vrcp.f32 %v1521_v27 }
 0xedd   :  { %3468 = vrcp.f32 %v1634_v61 }
 0xee6   :  { %v3467_v33 = vpop.eup %3466 }
 0xee7   :  { %v3469_v37 = vpop.eup %3468  ;;  %v1525_v42 = vmul.f32 %v3467_v33, %v3963_v21 }
 0xee8   :  { %v1638_v45 = vmul.f32 %v3469_v37, %v3967_v24 }
 0xf23   :  { %v1416_v22 = vpop.permute.xlu0 %1415 }
 0xf24   :  { %v1418_v57 = vmul.f32 %v3461_v20, %v1416_v22  ;;  %v4118_v22 = vld [vmem:[%s4339_s6] ss:$0 sm:$0xff] }
 0xf26   :  { %1420 = vrot.lane.b32.xlu1 %v1418_v57, %s3572_s3 }
 0xf35   :  { %v1528_v6 = vpop.permute.xlu1 %1527 }
 0xf36   :  { %v1530_v34 = vmul.f32 %v3467_v33, %v1528_v6 }
 0xf38   :  { %1532 = vrot.lane.b32.xlu0 %v1530_v34, %s3572_s3 }
 0xf3d   :  { %v1641_v1 = vpop.permute.xlu0 %1640 }
 0xf3e   :  { %v1643_v39 = vmul.f32 %v3469_v37, %v1641_v1 }
 0xf40   :  { %1645 = vrot.lane.b32.xlu1 %v1643_v39, %s3572_s3 }
 0xf98   :  { %v1421_v36 = vpop.permute.xlu1 %1420 }
 0xf99   :  { %v4038_v26 = vadd.f32 %v1421_v36, %v1413_v12 }
 0xf9b   :  { %3470 = vtanh.f32 %v4038_v26 }
 0xfa5   :  { %v3471_v15 = vpop.eup %3470 }
 0xfa6   :  { %1426 = vrot.lane.b32.xlu0 %v3471_v15, %s3571_s21 }
 0xfaa   :  { %v1533_v43 = vpop.permute.xlu0 %1532 }
 0xfab   :  { %v4043_v44 = vadd.f32 %v1533_v43, %v1525_v42 }
 0xfad   :  { %3472 = vtanh.f32 %v4043_v44 }
 0xfb2   :  { %v1646_v46 = vpop.permute.xlu1 %1645 }
 0xfb3   :  { %v4047_v47 = vadd.f32 %v1646_v46, %v1638_v45 }
 0xfb5   :  { %3474 = vtanh.f32 %v4047_v47 }
 0xfb7   :  { %v3473_v30 = vpop.eup %3472 }
 0xfb8   :  { %1538 = vrot.lane.b32.xlu1 %v3473_v30, %s3571_s21 }
 0xfbf   :  { %v3475_v50 = vpop.eup %3474 }
 0xfc0   :  { %1651 = vrot.lane.b32.xlu0 %v3475_v50, %s3571_s21 }
0x1018   :  { %v1427_v51 = vpop.permute.xlu0 %1426 }
0x1019   :  { %v1429_v21 = vmul.f32 %v3461_v20, %v1427_v51 }
0x101b   :  { %v1430_v52 = vpack.c.bf16 %v1429_v21, %v1429_v21 }
0x101d   :  { %1662 = vrot.lane.b32.xlu1 %v1430_v52, %s3572_s3 }
0x102a   :  { %v1539_v54 = vpop.permute.xlu1 %1538 }
0x102b   :  { %v1541_v55 = vmul.f32 %v3467_v33, %v1539_v54 }
0x102d   :  { %v1542_v56 = vpack.c.bf16 %v1541_v55, %v1541_v55 }
0x102f   :  { %1734 = vrot.lane.b32.xlu0 %v1542_v56, %s3572_s3 }
0x1032   :  { %v1652_v24 = vpop.permute.xlu0 %1651 }
0x1033   :  { %v4054_v58 = vmul.f32 %v3469_v37, %v1652_v24 }
0x1035   :  { %v1845_v59 = vpack.c.bf16 %v4054_v58, %v4054_v58 }
0x1037   :  { %1847 = vrot.lane.b32.xlu1 %v1845_v59, %s3572_s3 }
0x108f   :  { %v1663_v60 = vpop.permute.xlu1 %1662 }
0x1090   :  { %3197 = vmatmul.mubr.msk.bf16.vlgmr.msra.gmra.mrb[48].mxu1 %vm161_vm3, %v1663_v60 }
0x1091   :  { %3209 = vmatpush3.bf16.msra.mxu1 %v4063_v62  ;;  %3212 = vmatprep.mubr.msk.bf16.mxu1 %vm3569_vm1, %v3568_v0 }
0x1092   :  { %3210 = vmatprep.subr.bf16.mxu1 %v3568_v0 }
0x1095   :  { %3211 = vmatpush3.bf16.msra.mxu1 %v4072_v63 }
0x1096   :  { %3224 = vmatprep.subr.bf16.mxu1 %v3568_v0 }
0x1098   :  { %3213 = vmatmul.mubr.msk.bf16.vlgmr.msra.gmra.mrb[52].mxu1 %vm161_vm3, %v1663_v60 }
0x1099   :  { %3225 = vmatpush3.bf16.msra.mxu1 %v3769_v25  ;;  %3228 = vmatprep.mubr.msk.bf16.mxu1 %vm3569_vm1, %v3568_v0  ;;  %v4103_v25 = vld [vmem:[%s4337_s5 + $0x8] sm:$0xff]  }
0x109a   :  { %3226 = vmatprep.subr.bf16.mxu1 %v3568_v0 }
0x109d   :  { %3227 = vmatpush3.bf16.msra.mxu1 %v3782_v28 }
0x109e   :  { %3240 = vmatprep.subr.bf16.mxu1 %v3568_v0 }
0x10a1   :  { %v1735_v31 = vpop.permute.xlu0 %1734 }
0x10a2   :  { %3205 = vmatmul.mubr.msk.bf16.vlgmr.msra.gmra.mrb[52].mxu0 %vm161_vm3, %v1735_v31  ;;  %3229 = vmatmul.mubr.msk.bf16.vlgmr.msra.gmra.mrb[56].mxu1 %vm161_vm3, %v1735_v31 }
0x10a3   :  { %3217 = vmatpush3.bf16.msra.mxu0 %v4088_v2  ;;  %3220 = vmatprep.mubr.msk.bf16.mxu0 %vm3569_vm1, %v3568_v0 }
0x10a4   :  { %3218 = vmatprep.subr.bf16.mxu0 %v3568_v0  ;;  %3241 = vmatpush3.bf16.msra.mxu1 %v4002_v38 }
0x10a5   :  { %3242 = vmatprep.subr.bf16.mxu1 %v3568_v0  ;;  %3244 = vmatprep.mubr.msk.bf16.mxu1 %vm3569_vm1, %v3568_v0 }
0x10a7   :  { %3219 = vmatpush3.bf16.msra.mxu0 %v3792_v29  ;;  %v1660_v29 = vld [vmem:[#allocation2 + $0xc] sm:$0x3] }
0x10a8   :  { %3232 = vmatprep.subr.bf16.mxu0 %v3568_v0  ;;  %3243 = vmatpush3.bf16.msra.mxu1 %v4103_v25 }
0x10a9   :  { %v1848_v28 = vpop.permute.xlu1 %1847  ;;  %3256 = vmatprep.subr.bf16.mxu1 %v3568_v0 }
0x10aa   :  { %3221 = vmatmul.mubr.msk.bf16.vlgmr.msra.gmra.mrb[56].mxu0 %vm161_vm3, %v1848_v28 }
0x10ab   :  { %3233 = vmatpush3.bf16.msra.mxu0 %v4016_v41  ;;  %3236 = vmatprep.mubr.msk.bf16.mxu0 %vm3569_vm1, %v3568_v0 }
0x10ac   :  { %3234 = vmatprep.subr.bf16.mxu0 %v3568_v0 }
0x10af   :  { %3235 = vmatpush3.bf16.msra.mxu0 %v4025_v32 }
0x10b0   :  { %3248 = vmatprep.subr.bf16.mxu0 %v3568_v0 }
0x1163   :  { %v1701_v35 = vpop.f32.mrb[48].mxu1 }
0x1164   :  { %v1707_v3 = vadd.f32 %v1701_v35, %v1660_v29  ;;  %v3198_v7 = vpop.f32.mrb[49].mxu1 }
0x1165   :  { %v1704_v8 = vpop.f32.mrb[50].mxu1 }
0x1166   :  { %3476 = vtanh.f32 %v1707_v3  ;;  %v3199_v9 = vpop.f32.mrb[51].mxu1  ;;  %v2832_v12 = vmul.f32 -1.442695, %v1707_v3 }
0x116b   :  { %v1813_v10 = vpop.f32.mrb[52].mxu1 }
0x116c   :  { %v3214_v40 = vpop.f32.mrb[53].mxu1 }
0x116d   :  { %v1816_v13 = vpop.f32.mrb[54].mxu1 }
0x116e   :  { %v3215_v41 = vpop.f32.mrb[55].mxu1 }
0x1170   :  { %v3477_v14 = vpop.eup %3476 }
0x1171   :  { %1717 = vrot.lane.b32.xlu0 %v3477_v14, %s3571_s21 }
0x1175   :  { %v1773_v16 = vpop.f32.mrb[52].mxu0  ;;  %v1926_v49 = vpop.f32.mrb[56].mxu1 }
0x1176   :  { %v1814_v17 = vadd.f32 %v1813_v10, %v1773_v16  ;;  %v3206_v32 = vpop.f32.mrb[53].mxu0  ;;  %v3230_v18 = vpop.f32.mrb[57].mxu1 }
0x1177   :  { %v1776_v19 = vpop.f32.mrb[54].mxu0  ;;  %v1929_v20 = vpop.f32.mrb[58].mxu1 }
0x1178   :  { %v1819_v23 = vadd.f32 %v4118_v22, %v1814_v17  ;;  %v3207_v57 = vpop.f32.mrb[55].mxu0  ;;  %v3231_v27 = vpop.f32.mrb[59].mxu1  ;;  %v4160_v19 = vld [vmem:[%s4340_s7] sm:$0xff]   ;;  %v4169_v20 = vld [vmem:[%s4340_s7 + $0x8] sm:$0xff]  }
0x1179   :  { %v4186_v57 = vld [vmem:[%s4341_s8 + $0x8] sm:$0xff]  }
0x117a   :  { %3478 = vtanh.f32 %v1819_v23  ;;  %v2835_v42 = vmul.f32 -1.442695, %v1819_v23 }
0x117d   :  { %v1886_v4 = vpop.f32.mrb[56].mxu0 }
0x117e   :  { %v1927_v61 = vadd.f32 %v1926_v49, %v1886_v4  ;;  %v3222_v33 = vpop.f32.mrb[57].mxu0 }
0x117f   :  { %v1889_v6 = vpop.f32.mrb[58].mxu0 }
0x1180   :  { %v1932_v34 = vadd.f32 %v3820_v53, %v1927_v61  ;;  %v3223_v37 = vpop.f32.mrb[59].mxu0 }
0x1182   :  { %3480 = vtanh.f32 %v1932_v34  ;;  %v2838_v43 = vmul.f32 -1.442695, %v1932_v34 }
0x1183   :  { %3482 = vpow2.f32 %v2832_v12 }
0x1184   :  { %v3479_v1 = vpop.eup %3478 }
0x1185   :  { %1829 = vrot.lane.b32.xlu1 %v3479_v1, %s3571_s21 }
0x118c   :  { %v3481_v39 = vpop.eup %3480 }
0x118d   :  { %1942 = vrot.lane.b32.xlu0 %v3481_v39, %s3571_s21  ;;  %v3483_v36 = vpop.eup %3482 }
0x118e   :  { %v1711_v15 = vadd.f32 1.0, %v3483_v36 }
0x1190   :  { %3484 = vrcp.f32 %v1711_v15 }
0x1191   :  { %3486 = vpow2.f32 %v2835_v42 }
0x1192   :  { %3488 = vpow2.f32 %v2838_v43 }
0x119a   :  { %v3485_v45 = vpop.eup %3484 }
0x119b   :  { %v3487_v30 = vpop.eup %3486  ;;  %v1715_v60 = vmul.f32 %v3485_v45, %v4038_v26 }
0x119c   :  { %v1823_v50 = vadd.f32 1.0, %v3487_v30  ;;  %v3489_v51 = vpop.eup %3488 }
0x119d   :  { %v1936_v21 = vadd.f32 1.0, %v3489_v51 }
0x119e   :  { %3490 = vrcp.f32 %v1823_v50 }
0x119f   :  { %3492 = vrcp.f32 %v1936_v21 }
0x11a8   :  { %v3491_v52 = vpop.eup %3490 }
0x11a9   :  { %v3493_v56 = vpop.eup %3492  ;;  %v1827_v35 = vmul.f32 %v3491_v52, %v4043_v44 }
0x11aa   :  { %v1940_v8 = vmul.f32 %v3493_v56, %v4047_v47 }
0x11e3   :  { %v1718_v46 = vpop.permute.xlu0 %1717 }
0x11e4   :  { %v1720_v53 = vmul.f32 %v3485_v45, %v1718_v46 }
0x11e6   :  { %1722 = vrot.lane.b32.xlu1 %v1720_v53, %s3572_s3 }
0x11f7   :  { %v1830_v54 = vpop.permute.xlu1 %1829 }
0x11f8   :  { %v1832_v55 = vmul.f32 %v3491_v52, %v1830_v54  ;;  %v4204_v54 = vld [vmem:[%s4342_s9] ss:$0 sm:$0xff] }
0x11fa   :  { %1834 = vrot.lane.b32.xlu0 %v1832_v55, %s3572_s3 }
0x11ff   :  { %v1943_v24 = vpop.permute.xlu0 %1942 }
0x1200   :  { %v1945_v59 = vmul.f32 %v3493_v56, %v1943_v24 }
0x1202   :  { %1947 = vrot.lane.b32.xlu1 %v1945_v59, %s3572_s3 }
0x1258   :  { %v1723_v31 = vpop.permute.xlu1 %1722 }
0x1259   :  { %v4128_v28 = vadd.f32 %v1723_v31, %v1715_v60 }
0x125b   :  { %3494 = vtanh.f32 %v4128_v28 }
0x1265   :  { %v3495_v29 = vpop.eup %3494 }
0x1266   :  { %1728 = vrot.lane.b32.xlu0 %v3495_v29, %s3571_s21 }
0x126c   :  { %v1835_v3 = vpop.permute.xlu0 %1834 }
0x126d   :  { %v4133_v7 = vadd.f32 %v1835_v3, %v1827_v35 }
0x126f   :  { %3496 = vtanh.f32 %v4133_v7 }
0x1274   :  { %v1948_v9 = vpop.permute.xlu1 %1947 }
0x1275   :  { %v4137_v10 = vadd.f32 %v1948_v9, %v1940_v8 }
0x1277   :  { %3498 = vtanh.f32 %v4137_v10 }
0x1279   :  { %v3497_v26 = vpop.eup %3496 }
0x127a   :  { %1840 = vrot.lane.b32.xlu1 %v3497_v26, %s3571_s21 }
0x1281   :  { %v3499_v40 = vpop.eup %3498 }
0x1282   :  { %1953 = vrot.lane.b32.xlu0 %v3499_v40, %s3571_s21 }
0x12d8   :  { %v1729_v13 = vpop.permute.xlu0 %1728 }
0x12d9   :  { %v1731_v44 = vmul.f32 %v3485_v45, %v1729_v13 }
0x12db   :  { %v1732_v41 = vpack.c.bf16 %v1731_v44, %v1731_v44 }
0x12dd   :  { %1964 = vrot.lane.b32.xlu1 %v1732_v41, %s3572_s3 }
0x12ec   :  { %v1841_v14 = vpop.permute.xlu1 %1840 }
0x12ed   :  { %v1843_v16 = vmul.f32 %v3491_v52, %v1841_v14 }
0x12ef   :  { %v1844_v49 = vpack.c.bf16 %v1843_v16, %v1843_v16 }
0x12f1   :  { %2036 = vrot.lane.b32.xlu0 %v1844_v49, %s3572_s3 }
0x12f4   :  { %v1954_v47 = vpop.permute.xlu0 %1953 }
0x12f5   :  { %v4144_v17 = vmul.f32 %v3493_v56, %v1954_v47 }
0x12f7   :  { %v2147_v32 = vpack.c.bf16 %v4144_v17, %v4144_v17 }
0x12f9   :  { %2149 = vrot.lane.b32.xlu1 %v2147_v32, %s3572_s3 }
0x134f   :  { %v1965_v18 = vpop.permute.xlu1 %1964 }
0x1350   :  { %3237 = vmatmul.mubr.msk.bf16.vlgmr.msra.gmra.mrb[60].mxu0 %vm161_vm3, %v1965_v18 }
0x1351   :  { %3249 = vmatpush3.bf16.msra.mxu0 %v4063_v62  ;;  %3252 = vmatprep.mubr.msk.bf16.mxu0 %vm3569_vm1, %v3568_v0 }
0x1352   :  { %3250 = vmatprep.subr.bf16.mxu0 %v3568_v0 }
0x1355   :  { %3251 = vmatpush3.bf16.msra.mxu0 %v4072_v63 }
0x1356   :  { %3264 = vmatprep.subr.bf16.mxu0 %v3568_v0 }
0x1358   :  { %3253 = vmatmul.mubr.msk.bf16.vlgmr.msra.gmra.mrb[64].mxu0 %vm161_vm3, %v1965_v18 }
0x1359   :  { %3265 = vmatpush3.bf16.msra.mxu0 %v4160_v19  ;;  %3268 = vmatprep.mubr.msk.bf16.mxu0 %vm3569_vm1, %v3568_v0 }
0x135a   :  { %3266 = vmatprep.subr.bf16.mxu0 %v3568_v0 }
0x135d   :  { %3267 = vmatpush3.bf16.msra.mxu0 %v4169_v20 }
0x135e   :  { %3280 = vmatprep.subr.bf16.mxu0 %v3568_v0 }
0x1363   :  { %v2037_v23 = vpop.permute.xlu0 %2036 }
0x1364   :  { %3245 = vmatmul.mubr.msk.bf16.vlgmr.msra.gmra.mrb[60].mxu1 %vm161_vm3, %v2037_v23  ;;  %3269 = vmatmul.mubr.msk.bf16.vlgmr.msra.gmra.mrb[68].mxu0 %vm161_vm3, %v2037_v23 }
0x1365   :  { %3257 = vmatpush3.bf16.msra.mxu1 %v4088_v2  ;;  %3260 = vmatprep.mubr.msk.bf16.mxu1 %vm3569_vm1, %v3568_v0 }
0x1366   :  { %3258 = vmatprep.subr.bf16.mxu1 %v3568_v0  ;;  %3281 = vmatpush3.bf16.msra.mxu0 %v4063_v62  ;;  %v1962_v62 = vld [vmem:[#allocation2 + $0xe] sm:$0x3] }
0x1367   :  { %3282 = vmatprep.subr.bf16.mxu0 %v3568_v0  ;;  %3284 = vmatprep.mubr.msk.bf16.mxu0 %vm3569_vm1, %v3568_v0 }
0x1369   :  { %3259 = vmatpush3.bf16.msra.mxu1 %v4186_v57 }
0x136a   :  { %3283 = vmatpush3.bf16.msra.mxu0 %v4072_v63  ;;  %3272 = vmatprep.subr.bf16.mxu1 %v3568_v0 }
0x136b   :  { %v2150_v27 = vpop.permute.xlu1 %2149  ;;  %3296 = vmatprep.subr.bf16.mxu0 %v3568_v0 }
0x136c   :  { %3261 = vmatmul.mubr.msk.bf16.vlgmr.msra.gmra.mrb[64].mxu1 %vm161_vm3, %v2150_v27 }
0x136d   :  { %3273 = vmatpush3.bf16.msra.mxu1 %v4002_v38  ;;  %3276 = vmatprep.mubr.msk.bf16.mxu1 %vm3569_vm1, %v3568_v0 }
0x136e   :  { %3274 = vmatprep.subr.bf16.mxu1 %v3568_v0 }
0x1371   :  { %3275 = vmatpush3.bf16.msra.mxu1 %v4103_v25 }
0x1372   :  { %3288 = vmatprep.subr.bf16.mxu1 %v3568_v0 }
0x1423   :  { %v2003_v63 = vpop.f32.mrb[60].mxu0 }
0x1424   :  { %v2009_v4 = vadd.f32 %v2003_v63, %v1962_v62  ;;  %v3238_v61 = vpop.f32.mrb[61].mxu0 }
0x1425   :  { %v2006_v33 = vpop.f32.mrb[62].mxu0 }
0x1426   :  { %3500 = vtanh.f32 %v2009_v4  ;;  %v3239_v6 = vpop.f32.mrb[63].mxu0  ;;  %v2840_v60 = vmul.f32 -1.442695, %v2009_v4 }
0x142b   :  { %v2115_v34 = vpop.f32.mrb[64].mxu0 }
0x142c   :  { %v3254_v37 = vpop.f32.mrb[65].mxu0 }
0x142d   :  { %v2118_v1 = vpop.f32.mrb[66].mxu0 }
0x142e   :  { %v3255_v38 = vpop.f32.mrb[67].mxu0 }
0x1430   :  { %v3501_v39 = vpop.eup %3500 }
0x1431   :  { %2019 = vrot.lane.b32.xlu0 %v3501_v39, %s3571_s21 }
0x1437   :  { %v2075_v12 = vpop.f32.mrb[60].mxu1  ;;  %v2228_v36 = vpop.f32.mrb[68].mxu0 }
0x1438   :  { %v2116_v15 = vadd.f32 %v2115_v34, %v2075_v12  ;;  %v3246_v25 = vpop.f32.mrb[61].mxu1  ;;  %v3270_v42 = vpop.f32.mrb[69].mxu0 }
0x1439   :  { %v2078_v43 = vpop.f32.mrb[62].mxu1  ;;  %v2231_v45 = vpop.f32.mrb[70].mxu0 }
0x143a   :  { %v2121_v46 = vadd.f32 %v4118_v22, %v2116_v15  ;;  %v3247_v53 = vpop.f32.mrb[63].mxu1  ;;  %v3271_v30 = vpop.f32.mrb[71].mxu0 }
0x143c   :  { %3502 = vtanh.f32 %v2121_v46  ;;  %v2843_v35 = vmul.f32 -1.442695, %v2121_v46 }
0x143f   :  { %v2188_v50 = vpop.f32.mrb[64].mxu1 }
0x1440   :  { %v2229_v51 = vadd.f32 %v2228_v36, %v2188_v50  ;;  %v3262_v21 = vpop.f32.mrb[65].mxu1 }
0x1441   :  { %v2191_v52 = vpop.f32.mrb[66].mxu1 }
0x1442   :  { %v2234_v55 = vadd.f32 %v4204_v54, %v2229_v51  ;;  %v3263_v56 = vpop.f32.mrb[67].mxu1 }
0x1444   :  { %3504 = vtanh.f32 %v2234_v55  ;;  %v2846_v3 = vmul.f32 -1.442695, %v2234_v55 }
0x1445   :  { %3506 = vpow2.f32 %v2840_v60 }
0x1446   :  { %v3503_v24 = vpop.eup %3502 }
0x1447   :  { %2131 = vrot.lane.b32.xlu1 %v3503_v24, %s3571_s21 }
0x144e   :  { %v3505_v59 = vpop.eup %3504 }
0x144f   :  { %2244 = vrot.lane.b32.xlu0 %v3505_v59, %s3571_s21  ;;  %v3507_v31 = vpop.eup %3506 }
0x1450   :  { %v2013_v29 = vadd.f32 1.0, %v3507_v31 }
0x1452   :  { %3508 = vrcp.f32 %v2013_v29 }
0x1453   :  { %3510 = vpow2.f32 %v2843_v35 }
0x1454   :  { %3512 = vpow2.f32 %v2846_v3 }
0x145c   :  { %v3509_v8 = vpop.eup %3508 }
0x145d   :  { %v3511_v40 = vpop.eup %3510  ;;  %v2017_v23 = vmul.f32 %v3509_v8, %v4128_v28 }
0x145e   :  { %v2125_v13 = vadd.f32 1.0, %v3511_v40  ;;  %v3513_v44 = vpop.eup %3512 }
0x145f   :  { %v2238_v41 = vadd.f32 1.0, %v3513_v44 }
0x1460   :  { %3514 = vrcp.f32 %v2125_v13 }
0x1461   :  { %3516 = vrcp.f32 %v2238_v41 }
0x146a   :  { %v3515_v14 = vpop.eup %3514 }
0x146b   :  { %v3517_v47 = vpop.eup %3516  ;;  %v2129_v4 = vmul.f32 %v3515_v14, %v4133_v7 }
0x146c   :  { %v2242_v6 = vmul.f32 %v3517_v47, %v4137_v10 }
0x14a3   :  { %v2020_v9 = vpop.permute.xlu0 %2019 }
0x14a4   :  { %v2022_v26 = vmul.f32 %v3509_v8, %v2020_v9 }
0x14a6   :  { %2024 = vrot.lane.b32.xlu1 %v2022_v26, %s3572_s3 }
0x14b9   :  { %v2132_v16 = vpop.permute.xlu1 %2131 }
0x14ba   :  { %v2134_v49 = vmul.f32 %v3515_v14, %v2132_v16 }
0x14bc   :  { %2136 = vrot.lane.b32.xlu0 %v2134_v49, %s3572_s3 }
0x14c1   :  { %v2245_v32 = vpop.permute.xlu0 %2244 }
0x14c2   :  { %v2247_v18 = vmul.f32 %v3517_v47, %v2245_v32 }
0x14c4   :  { %2249 = vrot.lane.b32.xlu1 %v2247_v18, %s3572_s3 }
0x1518   :  { %v2025_v27 = vpop.permute.xlu1 %2024 }
0x1519   :  { %v2027_v62 = vadd.f32 %v2025_v27, %v2017_v23 }
0x151b   :  { %3518 = vtanh.f32 %v2027_v62 }
0x1525   :  { %v3519_v63 = vpop.eup %3518 }
0x1526   :  { %2030 = vrot.lane.b32.xlu0 %v3519_v63, %s3571_s21 }
0x152e   :  { %v2137_v61 = vpop.permute.xlu0 %2136 }
0x152f   :  { %v4215_v33 = vadd.f32 %v2137_v61, %v2129_v4 }
0x1531   :  { %3520 = vtanh.f32 %v4215_v33 }
0x1536   :  { %v2250_v34 = vpop.permute.xlu1 %2249 }
0x1537   :  { %v4219_v37 = vadd.f32 %v2250_v34, %v2242_v6 }
0x1539   :  { %3522 = vtanh.f32 %v4219_v37 }
0x153b   :  { %v3521_v28 = vpop.eup %3520 }
0x153c   :  { %2142 = vrot.lane.b32.xlu1 %v3521_v28, %s3571_s21 }
0x1543   :  { %v3523_v1 = vpop.eup %3522 }
0x1544   :  { %2255 = vrot.lane.b32.xlu0 %v3523_v1, %s3571_s21 }
0x1598   :  { %v2031_v38 = vpop.permute.xlu0 %2030 }
0x1599   :  { %v2033_v7 = vmul.f32 %v3509_v8, %v2031_v38 }
0x159b   :  { %v2034_v39 = vpack.c.bf16 %v2033_v7, %v2033_v7 }
0x159d   :  { %2311 = vrot.lane.b32.xlu0 %v2034_v39, %s3572_s3 }
0x15ae   :  { %v2143_v12 = vpop.permute.xlu1 %2142 }
0x15af   :  { %v2145_v36 = vmul.f32 %v3515_v14, %v2143_v12 }
0x15b1   :  { %v2146_v15 = vpack.c.bf16 %v2145_v36, %v2145_v36 }
0x15b3   :  { %2265 = vrot.lane.b32.xlu1 %v2146_v15, %s3572_s3 }
0x15b6   :  { %v2256_v10 = vpop.permute.xlu0 %2255 }
0x15b7   :  { %v4226_v25 = vmul.f32 %v3517_v47, %v2256_v10 }
0x15b9   :  { %v2382_v42 = vpack.c.bf16 %v4226_v25, %v4226_v25 }
0x15bb   :  { %2384 = vrot.lane.b32.xlu1 %v2382_v42, %s3572_s3 }
0x160f   :  { %v2312_v43 = vpop.permute.xlu0 %2311 }
0x1610   :  { %3285 = vmatmul.mubr.msk.bf16.vlgmr.msra.gmra.mrb[72].mxu0 %vm161_vm3, %v2312_v43 }
0x1611   :  { %3297 = vmatpush3.bf16.msra.mxu0 %v4160_v19  ;;  %3300 = vmatprep.mubr.msk.bf16.mxu0 %vm3569_vm1, %v3568_v0 }
0x1612   :  { %3298 = vmatprep.subr.bf16.mxu0 %v3568_v0 }
0x1615   :  { %3299 = vmatpush3.bf16.msra.mxu0 %v4169_v20 }
0x1616   :  { %3312 = vmatprep.subr.bf16.mxu0 %v3568_v0 }
0x1625   :  { %v2266_v45 = vpop.permute.xlu1 %2265 }
0x1626   :  { %3277 = vmatmul.mubr.msk.bf16.vlgmr.msra.gmra.mrb[68].mxu1 %vm161_vm3, %v2266_v45  ;;  %3301 = vmatmul.mubr.msk.bf16.vlgmr.msra.gmra.mrb[76].mxu0 %vm161_vm3, %v2266_v45 }
0x1627   :  { %3289 = vmatpush3.bf16.msra.mxu1 %v4088_v2  ;;  %3292 = vmatprep.mubr.msk.bf16.mxu1 %vm3569_vm1, %v3568_v0 }
0x1628   :  { %3290 = vmatprep.subr.bf16.mxu1 %v3568_v0  ;;  %3313 = vmatpush3.bf16.msra.mxu0 %v4160_v19 }
0x1629   :  { %3314 = vmatprep.subr.bf16.mxu0 %v3568_v0  ;;  %3316 = vmatprep.mubr.msk.bf16.mxu0 %vm3569_vm1, %v3568_v0 }
0x162b   :  { %3291 = vmatpush3.bf16.msra.mxu1 %v4186_v57 }
0x162c   :  { %3315 = vmatpush3.bf16.msra.mxu0 %v4169_v20  ;;  %3304 = vmatprep.subr.bf16.mxu1 %v3568_v0 }
0x162d   :  { %v2385_v46 = vpop.permute.xlu1 %2384  ;;  %3328 = vmatprep.subr.bf16.mxu0 %v3568_v0 }
0x162e   :  { %3293 = vmatmul.mubr.msk.bf16.vlgmr.msra.gmra.mrb[72].mxu1 %vm161_vm3, %v2385_v46 }
0x162f   :  { %3305 = vmatpush3.bf16.msra.mxu1 %v4088_v2  ;;  %3308 = vmatprep.mubr.msk.bf16.mxu1 %vm3569_vm1, %v3568_v0 }
0x1630   :  { %3306 = vmatprep.subr.bf16.mxu1 %v3568_v0 }
0x1633   :  { %3307 = vmatpush3.bf16.msra.mxu1 %v4186_v57 }
0x1634   :  { %3320 = vmatprep.subr.bf16.mxu1 %v3568_v0 }
0x16e3   :  { %v2350_v19 = vpop.f32.mrb[72].mxu0 }
0x16e4   :  { %v3286_v20 = vpop.f32.mrb[73].mxu0 }
0x16e5   :  { %v2353_v53 = vpop.f32.mrb[74].mxu0 }
0x16e6   :  { %v3287_v30 = vpop.f32.mrb[75].mxu0 }
0x16f9   :  { %v2304_v50 = vpop.f32.mrb[68].mxu1  ;;  %v2463_v51 = vpop.f32.mrb[76].mxu0 }
0x16fa   :  { %v2351_v21 = vadd.f32 %v2350_v19, %v2304_v50  ;;  %v3278_v52 = vpop.f32.mrb[69].mxu1  ;;  %v3302_v55 = vpop.f32.mrb[77].mxu0 }
0x16fb   :  { %v2307_v56 = vpop.f32.mrb[70].mxu1  ;;  %v2466_v2 = vpop.f32.mrb[78].mxu0 }
0x16fc   :  { %v2356_v24 = vadd.f32 %v4118_v22, %v2351_v21  ;;  %v3279_v59 = vpop.f32.mrb[71].mxu1  ;;  %v3303_v60 = vpop.f32.mrb[79].mxu0 }
0x16fe   :  { %3524 = vtanh.f32 %v2356_v24  ;;  %v2849_v40 = vmul.f32 -1.442695, %v2356_v24 }
0x1701   :  { %v2423_v31 = vpop.f32.mrb[72].mxu1 }
0x1702   :  { %v2464_v57 = vadd.f32 %v2463_v51, %v2423_v31  ;;  %v3294_v29 = vpop.f32.mrb[73].mxu1 }
0x1703   :  { %v2426_v35 = vpop.f32.mrb[74].mxu1  ;;  %v3353_v29 = vld [vmem:[%s4343_s10 + $0x8] sm:$0xff]  }
0x1704   :  { %v2469_v3 = vadd.f32 %v4204_v54, %v2464_v57  ;;  %v3295_v8 = vpop.f32.mrb[75].mxu1 }
0x1706   :  { %3526 = vtanh.f32 %v2469_v3  ;;  %v2852_v22 = vmul.f32 -1.442695, %v2469_v3 }
0x1707   :  { %3528 = vpow2.f32 %v2849_v40 }
0x1708   :  { %v3525_v9 = vpop.eup %3524  ;;  %3530 = vpow2.f32 %v2852_v22  ;;  %v3354_v22 = vld [vmem:[%s4344_s12] sm:$0xff]  }
0x1709   :  { %2366 = vrot.lane.b32.xlu0 %v3525_v9, %s3571_s21 }
0x1710   :  { %v3527_v26 = vpop.eup %3526 }
0x1711   :  { %2479 = vrot.lane.b32.xlu1 %v3527_v26, %s3571_s21  ;;  %v3529_v13 = vpop.eup %3528 }
0x1712   :  { %v2360_v44 = vadd.f32 1.0, %v3529_v13  ;;  %v3531_v41 = vpop.eup %3530  ;;  %v3355_v13 = vld [vmem:[%s4344_s12 + $0x8] sm:$0xff]  }
0x1713   :  { %v2473_v14 = vadd.f32 1.0, %v3531_v41 }
0x1714   :  { %3532 = vrcp.f32 %v2360_v44  ;;  %v2856_v44 = vld [vmem:[%s4345_s11] ss:$0 sm:$0xff] }
0x1715   :  { %3534 = vrcp.f32 %v2473_v14 }
0x171e   :  { %v3533_v16 = vpop.eup %3532 }
0x171f   :  { %v3535_v32 = vpop.eup %3534  ;;  %v2364_v27 = vmul.f32 %v3533_v16, %v4215_v33 }
0x1720   :  { %v2477_v4 = vmul.f32 %v3535_v32, %v4219_v37 }
0x177b   :  { %v2367_v49 = vpop.permute.xlu0 %2366 }
0x177c   :  { %v2369_v47 = vmul.f32 %v3533_v16, %v2367_v49 }
0x177e   :  { %2371 = vrot.lane.b32.xlu0 %v2369_v47, %s3572_s3 }
0x1783   :  { %v2480_v18 = vpop.permute.xlu1 %2479 }
0x1784   :  { %v2482_v23 = vmul.f32 %v3535_v32, %v2480_v18 }
0x1786   :  { %2484 = vrot.lane.b32.xlu1 %v2482_v23, %s3572_s3 }
0x17f0   :  { %v2372_v62 = vpop.permute.xlu0 %2371 }
0x17f1   :  { %v2374_v63 = vadd.f32 %v2372_v62, %v2364_v27 }
0x17f3   :  { %3536 = vtanh.f32 %v2374_v63 }
0x17f8   :  { %v2485_v61 = vpop.permute.xlu1 %2484 }
0x17f9   :  { %v2487_v6 = vadd.f32 %v2485_v61, %v2477_v4 }
0x17fb   :  { %3538 = vtanh.f32 %v2487_v6 }
0x17fd   :  { %v3537_v34 = vpop.eup %3536 }
0x17fe   :  { %2377 = vrot.lane.b32.xlu0 %v3537_v34, %s3571_s21 }
0x1805   :  { %v3539_v28 = vpop.eup %3538 }
0x1806   :  { %2490 = vrot.lane.b32.xlu1 %v3539_v28, %s3571_s21 }
0x1870   :  { %v2378_v1 = vpop.permute.xlu0 %2377 }
0x1871   :  { %v2380_v38 = vmul.f32 %v3533_v16, %v2378_v1 }
0x1873   :  { %v2381_v7 = vpack.c.bf16 %v2380_v38, %v2380_v38 }
0x1875   :  { %2547 = vrot.lane.b32.xlu1 %v2381_v7, %s3572_s3 }
0x1878   :  { %v2491_v33 = vpop.permute.xlu1 %2490 }
0x1879   :  { %v2493_v39 = vmul.f32 %v3535_v32, %v2491_v33 }
0x187b   :  { %v2499_v12 = vpack.c.bf16 %v2493_v39, %v2493_v39 }
0x187d   :  { %2501 = vrot.lane.b32.xlu0 %v2499_v12, %s3572_s3 }
0x18e7   :  { %v2548_v37 = vpop.permute.xlu1 %2547 }
0x18e8   :  { %3317 = vmatmul.mubr.msk.bf16.vlgmr.msra.gmra.mrb[80].mxu0 %vm161_vm3, %v2548_v37 }
0x18e9   :  { %3332 = vmatprep.mubr.msk.bf16.mxu0 %vm3569_vm1, %v3568_v0  ;;  %3329 = vmatpush3.bf16.msra.mxu0 %v3354_v22 }
0x18ea   :  { %3330 = vmatprep.subr.bf16.mxu0 %v3568_v0 }
0x18ed   :  { %3331 = vmatpush3.bf16.msra.mxu0 %v3355_v13 }
0x18ef   :  { %v2502_v36 = vpop.permute.xlu0 %2501 }
0x18f0   :  { %3309 = vmatmul.mubr.msk.bf16.vlgmr.msra.gmra.mrb[76].mxu1 %vm161_vm3, %v2502_v36 }
0x18f1   :  { %3324 = vmatprep.mubr.msk.bf16.mxu1 %vm3569_vm1, %v3568_v0 }
0x19bb   :  { %v2586_v15 = vpop.f32.mrb[80].mxu0 }
0x19bc   :  { %v3318_v10 = vpop.f32.mrb[81].mxu0 }
0x19bd   :  { %v2589_v42 = vpop.f32.mrb[82].mxu0 }
0x19be   :  { %v3319_v43 = vpop.f32.mrb[83].mxu0 }
0x19c3   :  { %v2540_v45 = vpop.f32.mrb[76].mxu1 }
0x19c4   :  { %v2587_v46 = vadd.f32 %v2586_v15, %v2540_v45  ;;  %v3310_v19 = vpop.f32.mrb[77].mxu1 }
0x19c5   :  { %v2543_v20 = vpop.f32.mrb[78].mxu1 }
0x19c6   :  { %v2592_v53 = vadd.f32 %v4204_v54, %v2587_v46  ;;  %v3311_v30 = vpop.f32.mrb[79].mxu1 }
0x19c8   :  { %3540 = vtanh.f32 %v2592_v53  ;;  %v2855_v51 = vmul.f32 -1.442695, %v2592_v53 }
0x19ca   :  { %3542 = vpow2.f32 %v2855_v51 }
0x19d2   :  { %v3541_v50 = vpop.eup %3540 }
0x19d3   :  { %2602 = vrot.lane.b32.xlu0 %v3541_v50, %s3571_s21 }
0x19d4   :  { %v3543_v21 = vpop.eup %3542 }
0x19d5   :  { %v2596_v52 = vadd.f32 1.0, %v3543_v21 }
0x19d7   :  { %3544 = vrcp.f32 %v2596_v52 }
0x19e1   :  { %v3545_v55 = vpop.eup %3544 }
0x19e2   :  { %v2600_v54 = vmul.f32 %v3545_v55, %v2487_v6 }
0x1a45   :  { %v2603_v56 = vpop.permute.xlu0 %2602 }
0x1a46   :  { %v2605_v2 = vmul.f32 %v3545_v55, %v2603_v56 }
0x1a48   :  { %2607 = vrot.lane.b32.xlu1 %v2605_v2, %s3572_s3 }
0x1a4c   :  { %749 = vrot.lane.b32.xlu1 %v3844_v48, %s3572_s3 }
0x1a50   :  { %1354 = vrot.lane.b32.xlu1 %v3974_v5, %s3572_s3 }
0x1a54   :  { %1958 = vrot.lane.b32.xlu1 %v4144_v17, %s3572_s3  ;;  %v3352_v17 = vld [vmem:[%s4343_s10] sm:$0xff]  }
0x1a55   :  { %3321 = vmatpush3.bf16.msra.mxu1 %v3352_v17 }
0x1a56   :  { %3322 = vmatprep.subr.bf16.mxu1 %v3568_v0  ;;  %v2860_v0 = vld [vmem:[%s4346_s13] ss:$0 sm:$0xff] }
0x1a58   :  { %2495 = vrot.lane.b32.xlu1 %v2493_v39, %s3572_s3 }
0x1a59   :  { %3323 = vmatpush3.bf16.msra.mxu1 %v3353_v29 }
0x1aba   :  { %v2608_v24 = vpop.permute.xlu1 %2607 }
0x1abb   :  { %v2610_v59 = vadd.f32 %v2608_v24, %v2600_v54 }
0x1abd   :  { %3546 = vtanh.f32 %v2610_v59 }
0x1abe   :  { %v750_v60 = vpop.permute.xlu1 %749 }
0x1abf   :  { %753 = vst.msk [vmem:[#allocation3] sm:$0x3] %vm752_vm4, %v750_v60 }
0x1ac2   :  { %v1355_v31 = vpop.permute.xlu1 %1354 }
0x1ac3   :  { %1357 = vst.msk [vmem:[#allocation3 + $0x4] sm:$0x3] %vm752_vm4, %v1355_v31 }
0x1ac6   :  { %v1959_v48 = vpop.permute.xlu1 %1958 }
0x1ac7   :  { %v3547_v57 = vpop.eup %3546  ;;  %1961 = vst.msk [vmem:[#allocation3 + $0x8] sm:$0x3] %vm752_vm4, %v1959_v48 }
0x1ac8   :  { %2613 = vrot.lane.b32.xlu0 %v3547_v57, %s3571_s21 }
0x1aca   :  { %v2496_v5 = vpop.permute.xlu1 %2495 }
0x1acb   :  { %2498 = vst.msk [vmem:[#allocation3 + $0xc] sm:$0x3] %vm752_vm4, %v2496_v5 }
0x1acc   :  { %1052 = vrot.lane.b32.xlu0 %v3909_v11, %s3572_s3 }
0x1ad0   :  { %1656 = vrot.lane.b32.xlu0 %v4054_v58, %s3572_s3 }
0x1ad4   :  { %2260 = vrot.lane.b32.xlu0 %v4226_v25, %s3572_s3 }
0x1b3a   :  { %v2614_v35 = vpop.permute.xlu0 %2613 }
0x1b3b   :  { %v2616_v11 = vmul.f32 %v3545_v55, %v2614_v35 }
0x1b3d   :  { %2618 = vrot.lane.b32.xlu0 %v2616_v11, %s3572_s3 }
0x1b3e   :  { %v1053_v58 = vpop.permute.xlu0 %1052 }
0x1b3f   :  { %1055 = vst.msk [vmem:[#allocation3 + $0x2] sm:$0x3] %vm752_vm4, %v1053_v58 }
0x1b42   :  { %v1657_v25 = vpop.permute.xlu0 %1656 }
0x1b43   :  { %1659 = vst.msk [vmem:[#allocation3 + $0x6] sm:$0x3] %vm752_vm4, %v1657_v25 }
0x1b46   :  { %v2261_v3 = vpop.permute.xlu0 %2260 }
0x1b47   :  { %2263 = vst.msk [vmem:[#allocation3 + $0xa] sm:$0x3] %vm752_vm4, %v2261_v3 }
0x1b4a   :  { %v2622_v9 = vld [vmem:[#allocation3] sm:$0xff] }
0x1baf   :  { %v2619_v8 = vpop.permute.xlu0 %2618 }
0x1bb0   :  { %2621 = vst.msk [vmem:[#allocation3 + $0xe] sm:$0x3] %vm752_vm4, %v2619_v8 }
0x1bb7   :  { %v2623_v26 = vld [vmem:[#allocation3 + $0x8] sm:$0xff] }
0x1bb8   :  { %v2624_v40 = vpack.c.bf16 %v2623_v26, %v2622_v9 }
0x1bba   :  { %3325 = vmatmul.mubr.msk.bf16.vlgmr.msra.gmra.mrb[80].mxu1 %vm161_vm3, %v2624_v40 }
0x1c8d   :  { %v2685_v41 = vpop.f32.mrb[80].mxu1 }
0x1c8e   :  { %v2686_v14 = vadd.f32 %v2856_v44, %v2685_v41  ;;  %v3326_v16 = vpop.f32.mrb[81].mxu1 }
0x1c8f   :  { %v2688_v49 = vpop.f32.mrb[82].mxu1 }
0x1c90   :  { %v2689_v47 = vadd.f32 %v2856_v44, %v2688_v49  ;;  %v3327_v32 = vpop.f32.mrb[83].mxu1  ;;  %v2692_v18 = vmax.f32 %v2686_v14, 0.0 }
0x1c92   :  { %v2693_v23 = vmax.f32 %v2689_v47, 0.0 }
0x1c94   :  { %v2694_v27 = vpack.c.bf16 %v2693_v23, %v2692_v18 }
0x1c96   :  { %3333 = vmatmul.mubr.msk.bf16.vlgmr.msra.gmra.mrb[84].mxu0 %vm161_vm3, %v2694_v27 }
0x1d69   :  { %v2755_v62 = vpop.f32.mrb[84].mxu0 }
0x1d6a   :  { %v2756_v63 = vadd.f32 %v2860_v0, %v2755_v62  ;;  %v3334_v4 = vpop.f32.mrb[85].mxu0 }
0x1d6b   :  { %v2758_v61 = vpop.f32.mrb[86].mxu0 }
0x1d6c   :  { %v2864_v6 = vmul.f32 -1.442695, %v2756_v63  ;;  %v2759_v34 = vadd.f32 %v2860_v0, %v2758_v61  ;;  %v3335_v28 = vpop.f32.mrb[87].mxu0 }
0x1d6e   :  { %3548 = vpow2.f32 %v2864_v6  ;;  %v2865_v1 = vmul.f32 -1.442695, %v2759_v34 }
0x1d70   :  { %3550 = vpow2.f32 %v2865_v1 }
0x1d78   :  { %v3549_v38 = vpop.eup %3548 }
0x1d79   :  { %v2768_v7 = vadd.f32 1.0, %v3549_v38 }
0x1d7a   :  { %v3551_v33 = vpop.eup %3550 }
0x1d7b   :  { %3552 = vrcp.f32 %v2768_v7  ;;  %v2769_v39 = vadd.f32 1.0, %v3551_v33 }
0x1d7d   :  { %3554 = vrcp.f32 %v2769_v39 }
0x1d85   :  { %v3553_v12 = vpop.eup %3552 }
0x1d86   :  { %2774 = vst.msk [vmem:[%s4347_s14] sm:$0xff] %vm161_vm3, %v3553_v12 }
0x1d87   :  { %v3555_v37 = vpop.eup %3554 }
0x1d88   :  { %2775 = vst.msk [vmem:[%s4347_s14 + $0x8] sm:$0xff] %vm161_vm3, %v3555_v37 }

</bundles_post_ra>
